<compile_context>
chip_gen: v6e
topology: v6e:2x2x1
jax: 0.10.0
libtpu: 0.0.40
codegen_flags: <defaults>
</compile_context>

<pallas_src>
import functools
from dataclasses import dataclass

import jax
import jax.numpy as jnp
import numpy as np
from jax.experimental import pallas as pl
from jax.experimental.pallas import tpu as pltpu


@dataclass
class GateConfig:
    hidden_dim: int = 64
    num_experts: int = 32
    topk: int = 2
    router_scale: float = 2.5


def _round_up(a, b):
    return (a + b - 1) // b * b


def _choose_block_tokens(T, row_align):
    """~256-row token tiles: big enough to amortize the ~0.35us/step grid
    overhead, small enough to (a) keep the ~10 live (tm,128) f32 intermediates
    near the 64-vreg file (no spill traffic) and (b) give >=2 grid steps per
    TensorCore at T>=1024 so the 'parallel' axis shards across v7x's two TCs.
    Prefer a tile that divides the aligned token count so the wrapper never has
    to jnp.pad x (a full extra HBM pass on a mem-bound kernel)."""
    Ta = _round_up(T, row_align)
    tm = min(256, Ta)
    tm = _round_up(tm, row_align)
    if Ta % tm != 0:
        cand = tm - row_align
        while cand >= 128:
            if Ta % cand == 0:
                return cand
            cand -= row_align
    return tm


def prepare_gate_params(weight, bias):
    """One-time (init-time) layout prep of the router parameters.

    weight: (E, H) -> wt: (H, E_pad) zero-padded transpose (lane-dense logits).
    bias:   (E,)   -> b_row: (1, E_pad) f32, padded experts filled with -1e30
                      so they can never win the (biased) top-k.
    Hoisted out of gate_forward so the hot path does no per-call HBM round trip.
    """
    E, H = weight.shape
    E_pad = _round_up(max(E, 128), 128)
    wt = jnp.zeros((H, E_pad), weight.dtype).at[:, :E].set(weight.T)
    b_row = jnp.full((1, E_pad), -1e30, dtype=jnp.float32)
    b_row = b_row.at[:, :E].set(bias.astype(jnp.float32).reshape(1, E))
    return wt, b_row, E


def _gate_kernel(x_ref, wt_ref, b_row_ref, w_out_ref, idx_out_ref, *,
                 topk, router_scale, num_experts, precision):
    # x_ref: (tm, H)   wt_ref: (H, E_pad)   b_row_ref: (1, E_pad) f32
    # w_out_ref / idx_out_ref: (tm, topk) compact output tiles.
    logits = jnp.dot(x_ref[...], wt_ref[...],
                     preferred_element_type=jnp.float32,
                     precision=precision)                               # (tm, E_pad)
    tm, e_pad = logits.shape

    col = jax.lax.broadcasted_iota(jnp.int32, (tm, e_pad), 1)
    if num_experts < e_pad:
        # Mask padded experts out of the softmax; skipped entirely at full occupancy.
        logits = jnp.where(col < num_experts, logits, jnp.float32(-1e30))

    # Softmax pieces. `e` stays un-normalized; only the k selected entries are
    # normalized at the end with an exact reciprocal of the tiny (tm,1) denom.
    m = jnp.max(logits, axis=-1, keepdims=True)                         # XLU
    e = jnp.exp(logits - m)                                             # EUP; pads -> 0
    denom = jnp.sum(e, axis=-1, keepdims=True)                          # XLU
    inv_scaled = jnp.float32(router_scale) / denom                      # exact, (tm,1)

    # Selection key: e + denom*bias orders identically to softmax(x)+bias (denom>0),
    # so the full normalized (tm, E_pad) scores are never materialized.
    key = e + denom * b_row_ref[...]                                    # (tm, E_pad)

    # Pack (column, 1 - e) into one f32: a single min-reduction per k yields both
    # the winning index (integer part, lowest-index tie-break) and the
    # un-normalized score (fractional part).  The clamp is E_pad-aware so
    # col + frac can never round up into the next column (safe for E_pad >= 256).
    frac_cap = jnp.float32(1.0 - e_pad * (2.0 ** -23))
    packed = col.astype(jnp.float32) + jnp.minimum(1.0 - e, frac_cap)

    w_cols = []
    i_cols = []
    cur = key
    for k in range(topk):                       # static unroll; fine for topk <= 4
        mx = jnp.max(cur, axis=-1, keepdims=True)                       # XLU 1/k
        pk = jnp.min(jnp.where(cur == mx, packed, jnp.float32(1e9)),
                     axis=-1, keepdims=True)                            # XLU 2/k
        idx_f = jnp.floor(pk)
        idx = idx_f.astype(jnp.int32)                                   # (tm, 1)
        e_at = 1.0 - (pk - idx_f)                                       # un-normalized score
        w_cols.append(e_at * inv_scaled)
        i_cols.append(idx)
        if k + 1 < topk:
            cur = jnp.where(col == idx, -jnp.inf, cur)                  # knock out winner

    # Compact (tm, topk) stores: tiny per-tile writeback DMA, no wrapper slice.
    w_out_ref[...] = jnp.concatenate(w_cols, axis=-1).astype(w_out_ref.dtype)
    idx_out_ref[...] = jnp.concatenate(i_cols, axis=-1)


def gate_forward(x, wt, b_row, *, num_experts, topk, router_scale,
                 block_tokens=None, precision=None):
    """x: (T, H); wt/b_row from prepare_gate_params.
    Returns (weights (T, topk) in x.dtype, indices (T, topk) int32)."""
    T, H = x.shape
    H_w, E_pad = wt.shape
    assert H_w == H
    assert 0 < topk <= num_experts <= E_pad

    itemsize = jnp.dtype(x.dtype).itemsize
    row_align = max(8, 32 // max(1, itemsize))        # 8 (f32), 16 (bf16), 32 (int8)
    if block_tokens is None:
        tm = _choose_block_tokens(T, row_align)
    else:
        tm = max(row_align, (int(block_tokens) // row_align) * row_align)
    T_pad = _round_up(T, tm)

    # Common case (tm | T): no pad, no extra HBM pass over x.
    x_in = x if T_pad == T else jnp.pad(x, ((0, T_pad - T), (0, 0)))

    kernel = functools.partial(
        _gate_kernel, topk=topk, router_scale=float(router_scale),
        num_experts=num_experts, precision=precision)

    w, idx = pl.pallas_call(
        kernel,
        out_shape=(
            jax.ShapeDtypeStruct((T_pad, topk), x.dtype),
            jax.ShapeDtypeStruct((T_pad, topk), jnp.int32),
        ),
        grid_spec=pltpu.PrefetchScalarGridSpec(
            num_scalar_prefetch=0,
            grid=(T_pad // tm,),
            in_specs=[
                pl.BlockSpec((tm, H), lambda i: (i, 0)),       # x token tile (pipelined)
                pl.BlockSpec((H, E_pad), lambda i: (0, 0)),    # router weight (resident)
                pl.BlockSpec((1, E_pad), lambda i: (0, 0)),    # bias row (resident)
            ],
            out_specs=[
                pl.BlockSpec((tm, topk), lambda i: (i, 0)),    # compact weights
                pl.BlockSpec((tm, topk), lambda i: (i, 0)),    # compact indices
            ],
        ),
        compiler_params=pltpu.CompilerParams(
            dimension_semantics=("parallel",),       # independent token tiles (2 TCs on v7x)
            vmem_limit_bytes=32 * 1024 * 1024,
        ),
    )(x_in, wt, b_row)

    if T_pad != T:
        w, idx = w[:T], idx[:T]                      # tiny (T_pad, topk) slice, rare path
    return w, idx


def _reference(x, weight, bias, topk, router_scale):
    """Exact-fp32 torch-parity reference (Precision.HIGHEST matmul)."""
    xf = x.astype(jnp.float32)
    wf = weight.astype(jnp.float32)
    logits = jnp.dot(xf, wf.T, precision=jax.lax.Precision.HIGHEST)
    scores = jax.nn.softmax(logits, axis=-1)
    biased = scores + bias[None, :].astype(jnp.float32)
    idx = jax.lax.top_k(biased, topk)[1]
    w = jnp.take_along_axis(scores, idx, axis=-1) * router_scale
    return w.astype(x.dtype), idx.astype(jnp.int32)


if __name__ == "__main__":
    cfg = GateConfig(hidden_dim=64, num_experts=32, topk=2, router_scale=2.5)

    key = jax.random.PRNGKey(0)
    kx, kw, kb = jax.random.split(key, 3)

    batch, seq = 2, 512                      # T = 1024 routed tokens
    T = batch * seq
    x = jax.random.normal(kx, (T, cfg.hidden_dim), dtype=jnp.float32)
    weight = jax.random.normal(kw, (cfg.num_experts, cfg.hidden_dim), dtype=jnp.float32) * 0.1
    bias = jax.random.normal(kb, (cfg.num_experts,), dtype=jnp.float32) * 0.01

    # --- f32 path: params prepared once (init-time), tm=256 -> grid of 4 tiles ---
    wt, b_row, E = prepare_gate_params(weight, bias)
    w_out, idx_out = gate_forward(x, wt, b_row, num_experts=E, topk=cfg.topk,
                                  router_scale=cfg.router_scale, block_tokens=256)
    jax.block_until_ready((w_out, idx_out))
    assert w_out.shape == (T, cfg.topk) and idx_out.shape == (T, cfg.topk)
    assert idx_out.dtype == jnp.int32

    w_ref, idx_ref = _reference(x, weight, bias, cfg.topk, cfg.router_scale)
    w_np = np.asarray(w_out).astype(np.float32)
    idx_np = np.asarray(idx_out)
    w_ref_np = np.asarray(w_ref).astype(np.float32)
    idx_ref_np = np.asarray(idx_ref)

    assert idx_np.min() >= 0 and idx_np.max() < cfg.num_experts

    # The kernel's matmul runs at default (single bf16-pass MXU) precision per
    # the perf review, so vs. the exact-fp32 reference only genuine near-ties in
    # the biased scores may pick a different expert, and matched weights differ
    # by at most ~1e-2 relative.
    mismatch = idx_np != idx_ref_np
    if mismatch.any():
        scores = np.asarray(jax.nn.softmax(
            jnp.dot(x, weight.T, precision=jax.lax.Precision.HIGHEST), axis=-1))
        biased = scores + np.asarray(bias)[None, :]
        r, c = np.nonzero(mismatch)
        gap = np.abs(biased[r, idx_np[r, c]] - biased[r, idx_ref_np[r, c]])
        assert gap.max() < 2e-2, f"expert-index mismatch beyond near-tie tolerance: {gap.max()}"
    ok = ~mismatch
    np.testing.assert_allclose(w_np[ok], w_ref_np[ok], rtol=2.5e-2, atol=1e-3)

    # --- bf16 path: operands hit the MXU natively; default tile heuristic (256) ---
    wt_bf, b_row_bf, _ = prepare_gate_params(weight.astype(jnp.bfloat16), bias)
    w_bf, idx_bf = gate_forward(x.astype(jnp.bfloat16), wt_bf, b_row_bf,
                                num_experts=E, topk=cfg.topk,
                                router_scale=cfg.router_scale)
    jax.block_until_ready((w_bf, idx_bf))
    assert w_bf.dtype == jnp.bfloat16 and w_bf.shape == (T, cfg.topk)
    wbf = np.asarray(w_bf.astype(jnp.float32))
    ibf = np.asarray(idx_bf)
    assert np.isfinite(wbf).all()
    assert (wbf > 0).all() and (wbf <= cfg.router_scale * 1.05).all()
    assert ibf.min() >= 0 and ibf.max() < cfg.num_experts

    print("KERNEL_OK")
</pallas_src>

<mosaic_0001>
module attributes {stable_mosaic.version = 11 : i64} {
  func.func @_gate_kernel(%arg0: i32, %arg1: memref<256x64xf32, #tpu.memory_space<vmem>>, %arg2: memref<64x128xf32, #tpu.memory_space<vmem>>, %arg3: memref<1x128xf32, #tpu.memory_space<vmem>>, %arg4: memref<256x2xf32, #tpu.memory_space<vmem>>, %arg5: memref<256x2xi32, #tpu.memory_space<vmem>>) attributes {dimension_semantics = [#tpu.dimension_semantics<parallel>], iteration_bounds = array<i64: 4>, scalar_prefetch = 0 : i64, scratch_operands = 0 : i64, tpu.core_type = #tpu.core_type<tc>, window_params = [{transform_indices = @transform_0, window_bounds = array<i64: 256, 64>}, {pipeline_mode = #tpu.pipeline_mode<synchronous>, transform_indices = @transform_1, window_bounds = array<i64: 64, 128>}, {pipeline_mode = #tpu.pipeline_mode<synchronous>, transform_indices = @transform_2, window_bounds = array<i64: 1, 128>}, {transform_indices = @transform_3, window_bounds = array<i64: 256, 2>}, {transform_indices = @transform_4, window_bounds = array<i64: 256, 2>}]} {
    %c0 = arith.constant 0 : index
    %c0_0 = arith.constant 0 : index
    %0 = vector.load %arg1[%c0, %c0_0] : memref<256x64xf32, #tpu.memory_space<vmem>>, vector<256x64xf32>
    %c0_1 = arith.constant 0 : index
    %c0_2 = arith.constant 0 : index
    %1 = vector.load %arg2[%c0_1, %c0_2] : memref<64x128xf32, #tpu.memory_space<vmem>>, vector<64x128xf32>
    %cst = arith.constant dense<0.000000e+00> : vector<256x128xf32>
    %2 = tpu.matmul %0, %1, %cst {dimension_numbers = #tpu.dot_dimension_numbers<[1], [0], [0], [1], [0, 0, 1, 1], [], []>} : vector<256x64xf32>, vector<64x128xf32>, vector<256x128xf32> -> vector<256x128xf32>
    %3 = tpu.iota {dimensions = array<i32: 1>} : vector<256x128xi32>
    %c32_i32 = arith.constant 32 : i32
    %4 = vector.broadcast %c32_i32 : i32 to vector<256x128xi32>
    %5 = arith.cmpi slt, %3, %4 : vector<256x128xi32>
    %cst_3 = arith.constant -1.000000e+30 : f32
    %6 = vector.broadcast %cst_3 : f32 to vector<256x128xf32>
    %7 = arith.select %5, %2, %6 : vector<256x128xi1>, vector<256x128xf32>
    %cst_4 = arith.constant dense<0xFF800000> : vector<256xf32>
    %8 = vector.multi_reduction <maximumf>, %7, %cst_4 [1] : vector<256x128xf32> to vector<256xf32>
    %9 = vector.shape_cast %8 : vector<256xf32> to vector<256x1xf32>
    %10 = vector.broadcast %9 : vector<256x1xf32> to vector<256x128xf32>
    %11 = arith.subf %7, %10 : vector<256x128xf32>
    %12 = math.exp %11 : vector<256x128xf32>
    %cst_5 = arith.constant dense<0.000000e+00> : vector<256xf32>
    %13 = vector.multi_reduction <add>, %12, %cst_5 [1] : vector<256x128xf32> to vector<256xf32>
    %14 = vector.shape_cast %13 : vector<256xf32> to vector<256x1xf32>
    %cst_6 = arith.constant 2.500000e+00 : f32
    %15 = vector.broadcast %cst_6 : f32 to vector<256x1xf32>
    %16 = arith.divf %15, %14 : vector<256x1xf32>
    %c0_7 = arith.constant 0 : index
    %c0_8 = arith.constant 0 : index
    %17 = vector.load %arg3[%c0_7, %c0_8] : memref<1x128xf32, #tpu.memory_space<vmem>>, vector<1x128xf32>
    %18 = vector.broadcast %14 : vector<256x1xf32> to vector<256x128xf32>
    %19 = vector.broadcast %17 : vector<1x128xf32> to vector<256x128xf32>
    %20 = arith.mulf %18, %19 : vector<256x128xf32>
    %21 = arith.addf %12, %20 : vector<256x128xf32>
    %22 = arith.sitofp %3 : vector<256x128xi32> to vector<256x128xf32>
    %cst_9 = arith.constant 1.000000e+00 : f32
    %23 = vector.broadcast %cst_9 : f32 to vector<256x128xf32>
    %24 = arith.subf %23, %12 : vector<256x128xf32>
    %cst_10 = arith.constant 0.999984741 : f32
    %25 = vector.broadcast %cst_10 : f32 to vector<256x128xf32>
    %26 = arith.minimumf %24, %25 : vector<256x128xf32>
    %27 = arith.addf %22, %26 : vector<256x128xf32>
    %cst_11 = arith.constant dense<0xFF800000> : vector<256xf32>
    %28 = vector.multi_reduction <maximumf>, %21, %cst_11 [1] : vector<256x128xf32> to vector<256xf32>
    %29 = vector.shape_cast %28 : vector<256xf32> to vector<256x1xf32>
    %30 = vector.broadcast %29 : vector<256x1xf32> to vector<256x128xf32>
    %31 = arith.cmpf oeq, %21, %30 : vector<256x128xf32>
    %cst_12 = arith.constant 1.000000e+09 : f32
    %32 = vector.broadcast %cst_12 : f32 to vector<256x128xf32>
    %33 = arith.select %31, %27, %32 : vector<256x128xi1>, vector<256x128xf32>
    %cst_13 = arith.constant dense<0x7F800000> : vector<256xf32>
    %34 = vector.multi_reduction <minimumf>, %33, %cst_13 [1] : vector<256x128xf32> to vector<256xf32>
    %35 = vector.shape_cast %34 : vector<256xf32> to vector<256x1xf32>
    %36 = math.floor %35 : vector<256x1xf32>
    %37 = arith.fptosi %36 : vector<256x1xf32> to vector<256x1xi32>
    %38 = arith.subf %35, %36 : vector<256x1xf32>
    %cst_14 = arith.constant 1.000000e+00 : f32
    %39 = vector.broadcast %cst_14 : f32 to vector<256x1xf32>
    %40 = arith.subf %39, %38 : vector<256x1xf32>
    %41 = arith.mulf %40, %16 : vector<256x1xf32>
    %42 = vector.broadcast %37 : vector<256x1xi32> to vector<256x128xi32>
    %43 = arith.cmpi eq, %3, %42 : vector<256x128xi32>
    %cst_15 = arith.constant 0xFF800000 : f32
    %44 = vector.broadcast %cst_15 : f32 to vector<256x128xf32>
    %45 = arith.select %43, %44, %21 : vector<256x128xi1>, vector<256x128xf32>
    %cst_16 = arith.constant dense<0xFF800000> : vector<256xf32>
    %46 = vector.multi_reduction <maximumf>, %45, %cst_16 [1] : vector<256x128xf32> to vector<256xf32>
    %47 = vector.shape_cast %46 : vector<256xf32> to vector<256x1xf32>
    %48 = vector.broadcast %47 : vector<256x1xf32> to vector<256x128xf32>
    %49 = arith.cmpf oeq, %45, %48 : vector<256x128xf32>
    %cst_17 = arith.constant 1.000000e+09 : f32
    %50 = vector.broadcast %cst_17 : f32 to vector<256x128xf32>
    %51 = arith.select %49, %27, %50 : vector<256x128xi1>, vector<256x128xf32>
    %cst_18 = arith.constant dense<0x7F800000> : vector<256xf32>
    %52 = vector.multi_reduction <minimumf>, %51, %cst_18 [1] : vector<256x128xf32> to vector<256xf32>
    %53 = vector.shape_cast %52 : vector<256xf32> to vector<256x1xf32>
    %54 = math.floor %53 : vector<256x1xf32>
    %55 = arith.fptosi %54 : vector<256x1xf32> to vector<256x1xi32>
    %56 = arith.subf %53, %54 : vector<256x1xf32>
    %cst_19 = arith.constant 1.000000e+00 : f32
    %57 = vector.broadcast %cst_19 : f32 to vector<256x1xf32>
    %58 = arith.subf %57, %56 : vector<256x1xf32>
    %59 = arith.mulf %58, %16 : vector<256x1xf32>
    %60 = tpu.concatenate %41, %59 in 1 : vector<256x1xf32>, vector<256x1xf32> -> vector<256x2xf32>
    %c0_20 = arith.constant 0 : index
    %c0_21 = arith.constant 0 : index
    %61 = vector.load %arg4[%c0_20, %c0_21] : memref<256x2xf32, #tpu.memory_space<vmem>>, vector<256x2xf32>
    tpu.vector_store %arg4[%c0_20, %c0_21], %60 {strides = array<i32>} : memref<256x2xf32, #tpu.memory_space<vmem>>, vector<256x2xf32>,
    %62 = tpu.concatenate %37, %55 in 1 : vector<256x1xi32>, vector<256x1xi32> -> vector<256x2xi32>
    %c0_22 = arith.constant 0 : index
    %c0_23 = arith.constant 0 : index
    %63 = vector.load %arg5[%c0_22, %c0_23] : memref<256x2xi32, #tpu.memory_space<vmem>>, vector<256x2xi32>
    tpu.vector_store %arg5[%c0_22, %c0_23], %62 {strides = array<i32>} : memref<256x2xi32, #tpu.memory_space<vmem>>, vector<256x2xi32>,
    return
  }
  func.func @transform_0(%arg0: i32) -> (i32, i32) {
    %c0_i32 = arith.constant 0 : i32
    %c0_i32_0 = arith.constant 0 : i32
    return %arg0, %c0_i32 : i32, i32
  }
  func.func @transform_1(%arg0: i32) -> (i32, i32) {
    %c0_i32 = arith.constant 0 : i32
    %c0_i32_0 = arith.constant 0 : i32
    %c0_i32_1 = arith.constant 0 : i32
    return %c0_i32, %c0_i32_0 : i32, i32
  }
  func.func @transform_2(%arg0: i32) -> (i32, i32) {
    %c0_i32 = arith.constant 0 : i32
    %c0_i32_0 = arith.constant 0 : i32
    %c0_i32_1 = arith.constant 0 : i32
    return %c0_i32, %c0_i32_0 : i32, i32
  }
  func.func @transform_3(%arg0: i32) -> (i32, i32) {
    %c0_i32 = arith.constant 0 : i32
    %c0_i32_0 = arith.constant 0 : i32
    return %arg0, %c0_i32 : i32, i32
  }
  func.func @transform_4(%arg0: i32) -> (i32, i32) {
    %c0_i32 = arith.constant 0 : i32
    %c0_i32_0 = arith.constant 0 : i32
    return %arg0, %c0_i32 : i32, i32
  }
}

</mosaic_0001>

<bundles_post_ra>
// kernel: tpu_custom_call.1
= control target key start
LH: loop header
LB: loop body
LE: loop exit
PB: predicated region body
PF: predicated region fallthrough
CT: control target
= control target key end

     0   :  { %s2519_s15 = smov 0   ;;  %s4383_s0 = inlined_call_operand.vmem [shape: f32[1024,64], index: 0, kind: input, shape index: {}]   ;;  %s4384_s1 = inlined_call_operand.vmem [shape: f32[64,128], index: 1, kind: input, shape index: {}]   ;;  %s4385_s2 = inlined_call_operand.vmem [shape: f32[1,128], index: 2, kind: input, shape index: {}]   ;;  %s4386_s3 = inlined_call_operand.vmem [shape: f32[1024,2], index: 3, kind: output, shape index: {0}]   ;;  %s4387_s4 = inlined_call_operand.vmem [shape: s32[1024,2], index: 4, kind: output, shape index: {1}]  }
   0x1 LB: > { %s2056_s16 = sadd.s32 4294967295, %s2492_s15   ;;  %p2060_p0 = scmp.ge.s32.totalorder %s2492_s15, 1  ;;  %s2492_s15 = sphi %s2519_s15, %s15_s15  }
   0x2   : > { %p166_p1 = scmp.lt.s32.totalorder %s2492_s15, 5 }
   0x4   : > { %p167_p2 = pnand %p2060_p0, %p166_p1 }
   0x6   : > { %170 = sbr.rel (%p167_p2) target bundleno = 1171 (0x493), region = 32 }
   0xb   : > { %v254_v0 = vld [vmem:[%s4384_s1 + $0x38] sm:$0xff]  ;;  %v253_v1 = vld [vmem:[%s4384_s1 + $0x30] sm:$0xff]  ;;  %s2061_s21 = sshll.u32 %s2056_s16, 5  ;;  %v252_v2 = vld [vmem:[%s4384_s1 + $0x28] sm:$0xff]  ;;  %vm255_vm0 = vcmask 523264   ;;  %v577_v40 = vlaneseq }
   0xc   : > { %2142 = vmatprep.subr.mxu0 %v254_v0  ;;  %2206 = vmatprep.subr.mxu1 %v254_v0  ;;  %p198_p3 = scmp.lt.s32.totalorder %s2061_s21, 127  ;;  %v251_v3 = vld [vmem:[%s4384_s1 + $0x20] sm:$0xff]  ;;  %v250_v4 = vld [vmem:[%s4384_s1 + $0x18] sm:$0xff]  ;;  %v249_v5 = vld [vmem:[%s4384_s1 + $0x10] sm:$0xff] }
   0xd   : > { %2143 = vmatpush3.msra.mxu0 %v254_v0  ;;  %2214 = vmatpush3.msra.mxu1 %v254_v0  ;;  %v248_v6 = vld [vmem:[%s4384_s1 + $0x8] sm:$0xff]  ;;  %v247_v7 = vld [vmem:[%s4384_s1] sm:$0xff]  ;;  %v2623_v41 = vand.u32 127, %v577_v40 }
   0xe   : > { %2144 = vmatprep.subr.mxu0 %v253_v1  ;;  %2207 = vmatprep.subr.mxu1 %v253_v1  ;;  %s4845_s21 = smov (!%p198_p3, %s2061_s21), 127 }
   0xf   : > { %2145 = vmatpush3.msra.mxu0 %v253_v1  ;;  %2215 = vmatpush3.msra.mxu1 %v253_v1  ;;  %s2545_s30 = sshll.u32 %s4845_s21, 3  ;;  %4512 = vst [vmem:[#allocation2_spill] sm:$0xff] %v2623_v41  ;;  %vm579_vm1 = vcmp.lt.s32.totalorder %v2623_v41, 32 }
  0x10   : > { %2146 = vmatprep.subr.mxu0 %v252_v2  ;;  %2208 = vmatprep.subr.mxu1 %v252_v2  ;;  %s2554_s9 = scalar_lea.vmem %s4383_s0, %s2545_s30  ;;  %s4004_s17 = scalar_lea.vmem %s4387_s4, %s2545_s30 }
  0x11   : > { %2147 = vmatpush3.msra.mxu0 %v252_v2  ;;  %2216 = vmatpush3.msra.mxu1 %v252_v2  ;;  %v215_v8 = vld [vmem:[%s2554_s9] sm:$0xff]  ;;  %v216_v10 = vld [vmem:[%s2554_s9 + $0x8] sm:$0xff]  ;;  %v217_v12 = vld [vmem:[%s2554_s9 + $0x10] sm:$0xff]  ;;  %s4018_s20 = scalar_lea.vmem %s4386_s3, %s2545_s30 }
  0x12   : > { %2148 = vmatprep.subr.mxu0 %v251_v3  ;;  %2209 = vmatprep.subr.mxu1 %v251_v3  ;;  %v231_v9 = vld [vmem:[%s2554_s9 + $0x80] sm:$0xff]  ;;  %v232_v11 = vld [vmem:[%s2554_s9 + $0x88] sm:$0xff]  ;;  %v233_v13 = vld [vmem:[%s2554_s9 + $0x90] sm:$0xff] }
  0x13   : > { %2149 = vmatpush3.msra.mxu0 %v251_v3  ;;  %2217 = vmatpush3.msra.mxu1 %v251_v3  ;;  %v218_v14 = vld [vmem:[%s2554_s9 + $0x18] sm:$0xff]  ;;  %v219_v16 = vld [vmem:[%s2554_s9 + $0x20] sm:$0xff]  ;;  %v220_v18 = vld [vmem:[%s2554_s9 + $0x28] sm:$0xff] }
  0x14   : > { %2150 = vmatprep.subr.mxu0 %v250_v4  ;;  %2210 = vmatprep.subr.mxu1 %v250_v4  ;;  %v234_v15 = vld [vmem:[%s2554_s9 + $0x98] sm:$0xff]  ;;  %v235_v17 = vld [vmem:[%s2554_s9 + $0xa0] sm:$0xff]  ;;  %v236_v19 = vld [vmem:[%s2554_s9 + $0xa8] sm:$0xff] }
  0x15   : > { %2151 = vmatpush3.msra.mxu0 %v250_v4  ;;  %2218 = vmatpush3.msra.mxu1 %v250_v4  ;;  %v221_v20 = vld [vmem:[%s2554_s9 + $0x30] sm:$0xff]  ;;  %v222_v22 = vld [vmem:[%s2554_s9 + $0x38] sm:$0xff]  ;;  %v223_v24 = vld [vmem:[%s2554_s9 + $0x40] sm:$0xff] }
  0x16   : > { %2152 = vmatprep.subr.mxu0 %v249_v5  ;;  %2211 = vmatprep.subr.mxu1 %v249_v5  ;;  %v237_v21 = vld [vmem:[%s2554_s9 + $0xb0] sm:$0xff]  ;;  %v238_v23 = vld [vmem:[%s2554_s9 + $0xb8] sm:$0xff]  ;;  %v239_v25 = vld [vmem:[%s2554_s9 + $0xc0] sm:$0xff] }
  0x17   : > { %2153 = vmatpush3.msra.mxu0 %v249_v5  ;;  %2219 = vmatpush3.msra.mxu1 %v249_v5  ;;  %v224_v26 = vld [vmem:[%s2554_s9 + $0x48] sm:$0xff]  ;;  %v225_v28 = vld [vmem:[%s2554_s9 + $0x50] sm:$0xff]  ;;  %v226_v30 = vld [vmem:[%s2554_s9 + $0x58] sm:$0xff] }
  0x18   : > { %2154 = vmatprep.subr.mxu0 %v248_v6  ;;  %2212 = vmatprep.subr.mxu1 %v248_v6  ;;  %v240_v27 = vld [vmem:[%s2554_s9 + $0xc8] sm:$0xff]  ;;  %v241_v29 = vld [vmem:[%s2554_s9 + $0xd0] sm:$0xff]  ;;  %v242_v31 = vld [vmem:[%s2554_s9 + $0xd8] sm:$0xff] }
  0x19   : > { %2155 = vmatpush3.msra.mxu0 %v248_v6  ;;  %2220 = vmatpush3.msra.mxu1 %v248_v6  ;;  %v227_v32 = vld [vmem:[%s2554_s9 + $0x60] sm:$0xff]  ;;  %v228_v34 = vld [vmem:[%s2554_s9 + $0x68] sm:$0xff]  ;;  %v229_v36 = vld [vmem:[%s2554_s9 + $0x70] sm:$0xff] }
  0x1a   : > { %2156 = vmatprep.subr.mxu0 %v247_v7  ;;  %2213 = vmatprep.subr.mxu1 %v247_v7  ;;  %v243_v33 = vld [vmem:[%s2554_s9 + $0xe0] sm:$0xff]  ;;  %v244_v35 = vld [vmem:[%s2554_s9 + $0xe8] sm:$0xff]  ;;  %v245_v37 = vld [vmem:[%s2554_s9 + $0xf0] sm:$0xff] }
  0x1b   : > { %2157 = vmatpush3.msra.mxu0 %v247_v7  ;;  %2221 = vmatpush3.msra.mxu1 %v247_v7  ;;  %v230_v38 = vld [vmem:[%s2554_s9 + $0x78] sm:$0xff] }
  0x1c   : > { %2158 = vmatprep.mubr.msk.f32.mxu0 %vm255_vm0, %v215_v8  ;;  %2182 = vmatprep.mubr.msk.f32.mxu1 %vm255_vm0, %v231_v9  ;;  %v246_v39 = vld [vmem:[%s2554_s9 + $0xf8] sm:$0xff] }
  0x1d   : > { %2159 = vmatmul.mubr.msk.f32.vlgmr.msra.gmra.mxu0 %vm255_vm0, %v216_v10  ;;  %2183 = vmatmul.mubr.msk.f32.vlgmr.msra.gmra.mxu1 %vm255_vm0, %v232_v11 }
  0x1e   : > { %2161 = vmatprep.mubr.msk.f32.mxu0 %vm255_vm0, %v217_v12  ;;  %2185 = vmatprep.mubr.msk.f32.mxu1 %vm255_vm0, %v233_v13 }
  0x21   : > { %2162 = vmatmul.mubr.msk.f32.gmra.mxu0 %vm255_vm0, %v218_v14  ;;  %2186 = vmatmul.mubr.msk.f32.gmra.mxu1 %vm255_vm0, %v234_v15 }
  0x22   : > { %2164 = vmatprep.mubr.msk.f32.mxu0 %vm255_vm0, %v219_v16  ;;  %2188 = vmatprep.mubr.msk.f32.mxu1 %vm255_vm0, %v235_v17 }
  0x25   : > { %2165 = vmatmul.mubr.msk.f32.gmra.mxu0 %vm255_vm0, %v220_v18  ;;  %2189 = vmatmul.mubr.msk.f32.gmra.mxu1 %vm255_vm0, %v236_v19 }
  0x26   : > { %2167 = vmatprep.mubr.msk.f32.mxu0 %vm255_vm0, %v221_v20  ;;  %2191 = vmatprep.mubr.msk.f32.mxu1 %vm255_vm0, %v237_v21 }
  0x29   : > { %2168 = vmatmul.mubr.msk.f32.gmra.mxu0 %vm255_vm0, %v222_v22  ;;  %2192 = vmatmul.mubr.msk.f32.gmra.mxu1 %vm255_vm0, %v238_v23 }
  0x2a   : > { %2170 = vmatprep.mubr.msk.f32.mxu0 %vm255_vm0, %v223_v24  ;;  %2194 = vmatprep.mubr.msk.f32.mxu1 %vm255_vm0, %v239_v25 }
  0x2d   : > { %2171 = vmatmul.mubr.msk.f32.gmra.mxu0 %vm255_vm0, %v224_v26  ;;  %2195 = vmatmul.mubr.msk.f32.gmra.mxu1 %vm255_vm0, %v240_v27 }
  0x2e   : > { %2173 = vmatprep.mubr.msk.f32.mxu0 %vm255_vm0, %v225_v28  ;;  %2197 = vmatprep.mubr.msk.f32.mxu1 %vm255_vm0, %v241_v29 }
  0x31   : > { %2174 = vmatmul.mubr.msk.f32.gmra.mxu0 %vm255_vm0, %v226_v30  ;;  %2198 = vmatmul.mubr.msk.f32.gmra.mxu1 %vm255_vm0, %v242_v31 }
  0x32   : > { %2176 = vmatprep.mubr.msk.f32.mxu0 %vm255_vm0, %v227_v32  ;;  %2200 = vmatprep.mubr.msk.f32.mxu1 %vm255_vm0, %v243_v33 }
  0x35   : > { %2177 = vmatmul.mubr.msk.f32.gmra.mxu0 %vm255_vm0, %v228_v34  ;;  %2201 = vmatmul.mubr.msk.f32.gmra.mxu1 %vm255_vm0, %v244_v35 }
  0x36   : > { %2179 = vmatprep.mubr.msk.f32.mxu0 %vm255_vm0, %v229_v36  ;;  %2203 = vmatprep.mubr.msk.f32.mxu1 %vm255_vm0, %v245_v37 }
  0x39   : > { %2180 = vmatmul.mubr.msk.f32.gmra.mxu0 %vm255_vm0, %v230_v38  ;;  %2204 = vmatmul.mubr.msk.f32.gmra.mxu1 %vm255_vm0, %v246_v39 }
  0xdd   : > { %v2160_v42 = vpop.f32.mrf.mxu0  ;;  %v2184_v43 = vpop.f32.mrf.mxu1 }
  0xde   : > { %v2628_v44 = vsel %vm579_vm1, %v2184_v43, -1e+30  ;;  %v2632_v45 = vsel %vm579_vm1, %v2160_v42, -1e+30 }
  0xdf   : > { %646 = vmax.xlane.f32.xlu1 %v2628_v44  ;;  %614 = vmax.xlane.f32.xlu0 %v2632_v45  ;;  %v418_v46 = vpop.f32.mrf.mxu0  ;;  %v498_v47 = vpop.f32.mrf.mxu1 }
  0xe0   : > { %v2638_v49 = vsel %vm579_vm1, %v418_v46, -1e+30  ;;  %v2652_v55 = vsel %vm579_vm1, %v498_v47, -1e+30 }
  0xe1   : > { %v2163_v48 = vpop.f32.mrf.mxu0  ;;  %v2187_v51 = vpop.f32.mrf.mxu1 }
  0xe2   : > { %v2642_v50 = vsel %vm579_vm1, %v2163_v48, -1e+30  ;;  %v2648_v53 = vsel %vm579_vm1, %v2187_v51, -1e+30 }
  0xe3   : > { %612 = vmax.xlane.f32.xlu0 %v2638_v49  ;;  %618 = vmax.xlane.f32.xlu1 %v2642_v50  ;;  %v428_v52 = vpop.f32.mrf.mxu0  ;;  %v508_v56 = vpop.f32.mrf.mxu1 }
  0xe4   : > { %v2658_v59 = vsel %vm579_vm1, %v508_v56, -1e+30  ;;  %v2662_v60 = vsel %vm579_vm1, %v428_v52, -1e+30 }
  0xe5   : > { %v2166_v54 = vpop.f32.mrf.mxu0  ;;  %v2190_v58 = vpop.f32.mrf.mxu1 }
  0xe6   : > { %v2668_v61 = vsel %vm579_vm1, %v2166_v54, -1e+30  ;;  %v2678_v1 = vsel %vm579_vm1, %v2190_v58, -1e+30 }
  0xe7   : > { %644 = vmax.xlane.f32.xlu0 %v2652_v55  ;;  %650 = vmax.xlane.f32.xlu1 %v2648_v53  ;;  %v438_v57 = vpop.f32.mrf.mxu0  ;;  %v518_v63 = vpop.f32.mrf.mxu1 }
  0xe8   : > { %v2672_v62 = vsel %vm579_vm1, %v438_v57, -1e+30  ;;  %v2682_v2 = vsel %vm579_vm1, %v518_v63, -1e+30 }
  0xe9   : > { %v2169_v0 = vpop.f32.mrf.mxu0  ;;  %v2193_v4 = vpop.f32.mrf.mxu1 }
  0xea   : > { %v2688_v5 = vsel %vm579_vm1, %v2169_v0, -1e+30  ;;  %v2698_v9 = vsel %vm579_vm1, %v2193_v4, -1e+30 }
  0xeb   : > { %648 = vmax.xlane.f32.xlu0 %v2658_v59  ;;  %616 = vmax.xlane.f32.xlu1 %v2662_v60  ;;  %v448_v3 = vpop.f32.mrf.mxu0  ;;  %v528_v7 = vpop.f32.mrf.mxu1 }
  0xec   : > { %v2692_v6 = vsel %vm579_vm1, %v448_v3, -1e+30  ;;  %v2702_v10 = vsel %vm579_vm1, %v528_v7, -1e+30 }
  0xed   : > { %v2172_v8 = vpop.f32.mrf.mxu0  ;;  %v2196_v12 = vpop.f32.mrf.mxu1 }
  0xee   : > { %v2708_v13 = vsel %vm579_vm1, %v2172_v8, -1e+30  ;;  %v2718_v17 = vsel %vm579_vm1, %v2196_v12, -1e+30 }
  0xef   : > { %622 = vmax.xlane.f32.xlu1 %v2668_v61  ;;  %620 = vmax.xlane.f32.xlu0 %v2672_v62  ;;  %v458_v11 = vpop.f32.mrf.mxu0  ;;  %v538_v15 = vpop.f32.mrf.mxu1 }
  0xf0   : > { %v2712_v14 = vsel %vm579_vm1, %v458_v11, -1e+30  ;;  %v2722_v18 = vsel %vm579_vm1, %v538_v15, -1e+30 }
  0xf1   : > { %v2175_v16 = vpop.f32.mrf.mxu0  ;;  %v2199_v20 = vpop.f32.mrf.mxu1 }
  0xf2   : > { %v2728_v21 = vsel %vm579_vm1, %v2175_v16, -1e+30  ;;  %v2738_v25 = vsel %vm579_vm1, %v2199_v20, -1e+30 }
  0xf3   : > { %654 = vmax.xlane.f32.xlu1 %v2678_v1  ;;  %652 = vmax.xlane.f32.xlu0 %v2682_v2  ;;  %v468_v19 = vpop.f32.mrf.mxu0  ;;  %v548_v23 = vpop.f32.mrf.mxu1 }
  0xf4   : > { %v2732_v22 = vsel %vm579_vm1, %v468_v19, -1e+30  ;;  %v2742_v26 = vsel %vm579_vm1, %v548_v23, -1e+30 }
  0xf5   : > { %v2178_v24 = vpop.f32.mrf.mxu0  ;;  %v2202_v28 = vpop.f32.mrf.mxu1 }
  0xf6   : > { %v2748_v29 = vsel %vm579_vm1, %v2178_v24, -1e+30  ;;  %v2758_v33 = vsel %vm579_vm1, %v2202_v28, -1e+30 }
  0xf7   : > { %626 = vmax.xlane.f32.xlu1 %v2688_v5  ;;  %624 = vmax.xlane.f32.xlu0 %v2692_v6  ;;  %v478_v27 = vpop.f32.mrf.mxu0  ;;  %v558_v31 = vpop.f32.mrf.mxu1 }
  0xf8   : > { %v2752_v30 = vsel %vm579_vm1, %v478_v27, -1e+30  ;;  %v2762_v34 = vsel %vm579_vm1, %v558_v31, -1e+30 }
  0xf9   : > { %v2181_v32 = vpop.f32.mrf.mxu0  ;;  %v2205_v36 = vpop.f32.mrf.mxu1 }
  0xfa   : > { %v2768_v37 = vsel %vm579_vm1, %v2181_v32, -1e+30  ;;  %v2778_v40 = vsel %vm579_vm1, %v2205_v36, -1e+30 }
  0xfb   : > { %658 = vmax.xlane.f32.xlu1 %v2698_v9  ;;  %656 = vmax.xlane.f32.xlu0 %v2702_v10  ;;  %v488_v35 = vpop.f32.mrf.mxu0  ;;  %v568_v39 = vpop.f32.mrf.mxu1 }
  0xfc   : > { %v2772_v38 = vsel %vm579_vm1, %v488_v35, -1e+30  ;;  %v2782_v42 = vsel %vm579_vm1, %v568_v39, -1e+30 }
  0xff   : > { %630 = vmax.xlane.f32.xlu1 %v2708_v13  ;;  %628 = vmax.xlane.f32.xlu0 %v2712_v14 }
 0x103   : > { %662 = vmax.xlane.f32.xlu1 %v2718_v17  ;;  %660 = vmax.xlane.f32.xlu0 %v2722_v18 }
 0x107   : > { %634 = vmax.xlane.f32.xlu1 %v2728_v21  ;;  %632 = vmax.xlane.f32.xlu0 %v2732_v22 }
 0x10b   : > { %666 = vmax.xlane.f32.xlu1 %v2738_v25  ;;  %664 = vmax.xlane.f32.xlu0 %v2742_v26 }
 0x10f   : > { %638 = vmax.xlane.f32.xlu1 %v2748_v29  ;;  %636 = vmax.xlane.f32.xlu0 %v2752_v30 }
 0x113   : > { %670 = vmax.xlane.f32.xlu1 %v2758_v33  ;;  %668 = vmax.xlane.f32.xlu0 %v2762_v34 }
 0x117   : > { %642 = vmax.xlane.f32.xlu1 %v2768_v37  ;;  %640 = vmax.xlane.f32.xlu0 %v2772_v38 }
 0x11b   : > { %674 = vmax.xlane.f32.xlu1 %v2778_v40  ;;  %672 = vmax.xlane.f32.xlu0 %v2782_v42 }
 0x168   : > { %v647_v43 = vpop.xlane.xlu1 %646  ;;  %v615_v46 = vpop.xlane.xlu0 %614 }
 0x169   : > { %v677_v47 = vsub.f32 %v2632_v45, %v615_v46  ;;  %v693_v48 = vsub.f32 %v2628_v44, %v647_v43 }
 0x16b   : > { %v710_v51 = vmul.f32 1.442695, %v677_v47  ;;  %v742_v57 = vmul.f32 1.442695, %v693_v48 }
 0x16c   : > { %v613_v52 = vpop.xlane.xlu0 %612  ;;  %v619_v54 = vpop.xlane.xlu1 %618 }
 0x16d   : > { %v676_v56 = vsub.f32 %v2638_v49, %v613_v52  ;;  %2358 = vpow2.f32 %v710_v51  ;;  %v679_v58 = vsub.f32 %v2642_v50, %v619_v54 }
 0x16f   : > { %v708_v63 = vmul.f32 1.442695, %v676_v56  ;;  %v714_v45 = vmul.f32 1.442695, %v679_v58 }
 0x170   : > { %v645_v0 = vpop.xlane.xlu0 %644  ;;  %v651_v3 = vpop.xlane.xlu1 %650 }
 0x171   : > { %2360 = vpow2.f32 %v708_v63  ;;  %v692_v4 = vsub.f32 %v2652_v55, %v645_v0  ;;  %v695_v7 = vsub.f32 %v2648_v53, %v651_v3 }
 0x172   : > { %2362 = vpow2.f32 %v742_v57 }
 0x173   : > { %v740_v44 = vmul.f32 1.442695, %v692_v4  ;;  %v746_v12 = vmul.f32 1.442695, %v695_v7 }
 0x174   : > { %v649_v8 = vpop.xlane.xlu0 %648  ;;  %v617_v11 = vpop.xlane.xlu1 %616 }
 0x175   : > { %2364 = vpow2.f32 %v740_v44  ;;  %v678_v49 = vsub.f32 %v2662_v60, %v617_v11  ;;  %v694_v50 = vsub.f32 %v2658_v59, %v649_v8 }
 0x176   : > { %2366 = vpow2.f32 %v714_v45 }
 0x177   : > { %v712_v15 = vmul.f32 1.442695, %v678_v49  ;;  %2368 = vpow2.f32 %v746_v12  ;;  %v744_v20 = vmul.f32 1.442695, %v694_v50 }
 0x178   : > { %v623_v16 = vpop.xlane.xlu1 %622  ;;  %v621_v19 = vpop.xlane.xlu0 %620 }
 0x179   : > { %v681_v55 = vsub.f32 %v2668_v61, %v623_v16  ;;  %2370 = vpow2.f32 %v712_v15  ;;  %v680_v53 = vsub.f32 %v2672_v62, %v621_v19 }
 0x17a   : > { %v2796_v23 = vpop.eup %2358 }
 0x17b   : > { %v718_v24 = vmul.f32 1.442695, %v681_v55  ;;  %774 = vadd.xlane.f32.xlu1 %v2796_v23  ;;  %v716_v31 = vmul.f32 1.442695, %v680_v53 }
 0x17c   : > { %v655_v27 = vpop.xlane.xlu1 %654  ;;  %v653_v60 = vpop.xlane.xlu0 %652 }
 0x17d   : > { %2372 = vpow2.f32 %v718_v24  ;;  %v697_v59 = vsub.f32 %v2678_v1, %v655_v27  ;;  %v696_v61 = vsub.f32 %v2682_v2, %v653_v60 }
 0x17e   : > { %v2800_v28 = vpop.eup %2360  ;;  %2374 = vpow2.f32 %v744_v20 }
 0x17f   : > { %v2803_v32 = vpop.eup %2362  ;;  %v750_v35 = vmul.f32 1.442695, %v697_v59  ;;  %772 = vadd.xlane.f32.xlu0 %v2800_v28  ;;  %v748_v1 = vmul.f32 1.442695, %v696_v61 }
 0x180   : > { %806 = vadd.xlane.f32.xlu1 %v2803_v32  ;;  %v627_v62 = vpop.xlane.xlu1 %626  ;;  %v625_v36 = vpop.xlane.xlu0 %624 }
 0x181   : > { %2376 = vpow2.f32 %v750_v35  ;;  %v683_v39 = vsub.f32 %v2688_v5, %v627_v62  ;;  %v682_v46 = vsub.f32 %v2692_v6, %v625_v36 }
 0x182   : > { %v2808_v43 = vpop.eup %2364  ;;  %2378 = vpow2.f32 %v716_v31 }
 0x183   : > { %v2811_v47 = vpop.eup %2366  ;;  %v722_v2 = vmul.f32 1.442695, %v683_v39  ;;  %804 = vadd.xlane.f32.xlu0 %v2808_v43  ;;  %v720_v5 = vmul.f32 1.442695, %v682_v46 }
 0x184   : > { %778 = vadd.xlane.f32.xlu1 %v2811_v47  ;;  %v659_v48 = vpop.xlane.xlu1 %658  ;;  %v657_v51 = vpop.xlane.xlu0 %656 }
 0x185   : > { %2380 = vpow2.f32 %v722_v2  ;;  %v699_v52 = vsub.f32 %v2698_v9, %v659_v48  ;;  %v2816_v54 = vpop.eup %2368  ;;  %v698_v56 = vsub.f32 %v2702_v10, %v657_v51 }
 0x186   : > { %2382 = vpow2.f32 %v748_v1  ;;  %v2819_v57 = vpop.eup %2370 }
 0x187   : > { %v754_v6 = vmul.f32 1.442695, %v699_v52  ;;  %776 = vadd.xlane.f32.xlu0 %v2819_v57  ;;  %v752_v9 = vmul.f32 1.442695, %v698_v56 }
 0x188   : > { %810 = vadd.xlane.f32.xlu1 %v2816_v54  ;;  %v631_v58 = vpop.xlane.xlu1 %630  ;;  %v629_v63 = vpop.xlane.xlu0 %628 }
 0x189   : > { %2384 = vpow2.f32 %v754_v6  ;;  %v685_v0 = vsub.f32 %v2708_v13, %v631_v58  ;;  %v684_v4 = vsub.f32 %v2712_v14, %v629_v63 }
 0x18a   : > { %v2824_v3 = vpop.eup %2372  ;;  %2386 = vpow2.f32 %v720_v5 }
 0x18b   : > { %v2827_v7 = vpop.eup %2374  ;;  %v726_v10 = vmul.f32 1.442695, %v685_v0  ;;  %v724_v13 = vmul.f32 1.442695, %v684_v4 }
 0x18c   : > { %782 = vadd.xlane.f32.xlu1 %v2824_v3  ;;  %808 = vadd.xlane.f32.xlu0 %v2827_v7  ;;  %v663_v45 = vpop.xlane.xlu1 %662  ;;  %v661_v44 = vpop.xlane.xlu0 %660 }
 0x18d   : > { %2388 = vpow2.f32 %v726_v10  ;;  %v701_v8 = vsub.f32 %v2718_v17, %v663_v45  ;;  %v700_v12 = vsub.f32 %v2722_v18, %v661_v44 }
 0x18e   : > { %v2832_v11 = vpop.eup %2376  ;;  %2390 = vpow2.f32 %v752_v9 }
 0x18f   : > { %v2835_v49 = vpop.eup %2378  ;;  %v758_v14 = vmul.f32 1.442695, %v701_v8  ;;  %v756_v17 = vmul.f32 1.442695, %v700_v12 }
 0x190   : > { %814 = vadd.xlane.f32.xlu1 %v2832_v11  ;;  %780 = vadd.xlane.f32.xlu0 %v2835_v49  ;;  %v635_v50 = vpop.xlane.xlu1 %634  ;;  %v633_v15 = vpop.xlane.xlu0 %632 }
 0x191   : > { %2392 = vpow2.f32 %v758_v14  ;;  %v687_v16 = vsub.f32 %v2728_v21, %v635_v50  ;;  %v686_v55 = vsub.f32 %v2732_v22, %v633_v15 }
 0x192   : > { %v2840_v19 = vpop.eup %2380  ;;  %2394 = vpow2.f32 %v724_v13 }
 0x193   : > { %v2843_v20 = vpop.eup %2382  ;;  %v730_v18 = vmul.f32 1.442695, %v687_v16  ;;  %v728_v21 = vmul.f32 1.442695, %v686_v55 }
 0x194   : > { %786 = vadd.xlane.f32.xlu1 %v2840_v19  ;;  %812 = vadd.xlane.f32.xlu0 %v2843_v20  ;;  %v667_v53 = vpop.xlane.xlu1 %666  ;;  %v665_v24 = vpop.xlane.xlu0 %664 }
 0x195   : > { %2396 = vpow2.f32 %v730_v18  ;;  %v703_v27 = vsub.f32 %v2738_v25, %v667_v53  ;;  %v702_v59 = vsub.f32 %v2742_v26, %v665_v24  ;;  %v2917_v53 = vld [vmem:[%s4385_s2] ss:$0 sm:$0xff] }
 0x196   : > { %v2848_v60 = vpop.eup %2384  ;;  %2398 = vpow2.f32 %v756_v17 }
 0x197   : > { %v2851_v31 = vpop.eup %2386  ;;  %v762_v22 = vmul.f32 1.442695, %v703_v27  ;;  %v760_v25 = vmul.f32 1.442695, %v702_v59 }
 0x198   : > { %818 = vadd.xlane.f32.xlu1 %v2848_v60  ;;  %784 = vadd.xlane.f32.xlu0 %v2851_v31  ;;  %v639_v61 = vpop.xlane.xlu1 %638  ;;  %v637_v35 = vpop.xlane.xlu0 %636 }
 0x199   : > { %2400 = vpow2.f32 %v762_v22  ;;  %v689_v62 = vsub.f32 %v2748_v29, %v639_v61  ;;  %v688_v39 = vsub.f32 %v2752_v30, %v637_v35 }
 0x19a   : > { %v2856_v36 = vpop.eup %2388  ;;  %2402 = vpow2.f32 %v728_v21 }
 0x19b   : > { %v2859_v1 = vpop.eup %2390  ;;  %v734_v26 = vmul.f32 1.442695, %v689_v62  ;;  %v732_v29 = vmul.f32 1.442695, %v688_v39 }
 0x19c   : > { %790 = vadd.xlane.f32.xlu1 %v2856_v36  ;;  %816 = vadd.xlane.f32.xlu0 %v2859_v1  ;;  %v671_v46 = vpop.xlane.xlu1 %670  ;;  %v669_v2 = vpop.xlane.xlu0 %668 }
 0x19d   : > { %2404 = vpow2.f32 %v734_v26  ;;  %v705_v48 = vsub.f32 %v2758_v33, %v671_v46  ;;  %v704_v52 = vsub.f32 %v2762_v34, %v669_v2 }
 0x19e   : > { %v2864_v51 = vpop.eup %2392  ;;  %2406 = vpow2.f32 %v760_v25 }
 0x19f   : > { %v2867_v5 = vpop.eup %2394  ;;  %v766_v30 = vmul.f32 1.442695, %v705_v48  ;;  %v764_v33 = vmul.f32 1.442695, %v704_v52 }
 0x1a0   : > { %822 = vadd.xlane.f32.xlu1 %v2864_v51  ;;  %788 = vadd.xlane.f32.xlu0 %v2867_v5  ;;  %v643_v56 = vpop.xlane.xlu1 %642  ;;  %v641_v6 = vpop.xlane.xlu0 %640 }
 0x1a1   : > { %2408 = vpow2.f32 %v766_v30  ;;  %v691_v58 = vsub.f32 %v2768_v37, %v643_v56  ;;  %v690_v0 = vsub.f32 %v2772_v38, %v641_v6 }
 0x1a2   : > { %v2872_v63 = vpop.eup %2396  ;;  %2410 = vpow2.f32 %v732_v29 }
 0x1a3   : > { %v2875_v9 = vpop.eup %2398  ;;  %v738_v34 = vmul.f32 1.442695, %v691_v58  ;;  %v736_v37 = vmul.f32 1.442695, %v690_v0 }
 0x1a4   : > { %794 = vadd.xlane.f32.xlu1 %v2872_v63  ;;  %820 = vadd.xlane.f32.xlu0 %v2875_v9  ;;  %v675_v4 = vpop.xlane.xlu1 %674  ;;  %v673_v10 = vpop.xlane.xlu0 %672 }
 0x1a5   : > { %2412 = vpow2.f32 %v738_v34  ;;  %v707_v45 = vsub.f32 %v2778_v40, %v675_v4  ;;  %v706_v8 = vsub.f32 %v2782_v42, %v673_v10 }
 0x1a6   : > { %v2880_v44 = vpop.eup %2400  ;;  %2414 = vpow2.f32 %v764_v33 }
 0x1a7   : > { %v2883_v13 = vpop.eup %2402  ;;  %v770_v38 = vmul.f32 1.442695, %v707_v45  ;;  %v768_v14 = vmul.f32 1.442695, %v706_v8 }
 0x1a8   : > { %826 = vadd.xlane.f32.xlu1 %v2880_v44  ;;  %792 = vadd.xlane.f32.xlu0 %v2883_v13 }
 0x1a9   : > { %2416 = vpow2.f32 %v770_v38 }
 0x1aa   : > { %v2887_v12 = vpop.eup %2404  ;;  %2418 = vpow2.f32 %v736_v37 }
 0x1ab   : > { %v2889_v50 = vpop.eup %2406  ;;  %2420 = vpow2.f32 %v768_v14 }
 0x1ac   : > { %798 = vadd.xlane.f32.xlu1 %v2887_v12  ;;  %824 = vadd.xlane.f32.xlu0 %v2889_v50 }
 0x1ae   : > { %v2893_v40 = vpop.eup %2408 }
 0x1af   : > { %v2895_v42 = vpop.eup %2410 }
 0x1b0   : > { %830 = vadd.xlane.f32.xlu1 %v2893_v40  ;;  %796 = vadd.xlane.f32.xlu0 %v2895_v42 }
 0x1b2   : > { %v2899_v15 = vpop.eup %2412 }
 0x1b3   : > { %v2901_v16 = vpop.eup %2414 }
 0x1b4   : > { %802 = vadd.xlane.f32.xlu1 %v2899_v15  ;;  %828 = vadd.xlane.f32.xlu0 %v2901_v16 }
 0x1b6   : > { %v2905_v17 = vpop.eup %2416 }
 0x1b7   : > { %v2907_v55 = vpop.eup %2418 }
 0x1b8   : > { %834 = vadd.xlane.f32.xlu1 %v2905_v17  ;;  %800 = vadd.xlane.f32.xlu0 %v2907_v55  ;;  %v2911_v18 = vpop.eup %2420 }
 0x1bc   : > { %832 = vadd.xlane.f32.xlu0 %v2911_v18 }
 0x204   : > { %v2919_v24 = vpop.xlane.xlu1 %774 }
 0x205   : > { %4513 = vst [vmem:[#allocation3_spill] sm:$0xff] %v2919_v24  ;;  %v908_v27 = vmul.f32 %v2917_v53, %v2919_v24 }
 0x207   : > { %v2926_v59 = vadd.f32 %v2796_v23, %v908_v27 }
 0x208   : > { %v2923_v21 = vpop.xlane.xlu0 %772 }
 0x209   : > { %4514 = vst [vmem:[#allocation4_spill] sm:$0xff] %v2923_v21  ;;  %v2928_v22 = vpop.xlane.xlu1 %806  ;;  %v907_v61 = vmul.f32 %v2917_v53, %v2923_v21  ;;  %1070 = vmax.xlane.f32.xlu1 %v2926_v59 }
 0x20a   : > { %4515 = vst [vmem:[#allocation5_spill] sm:$0xff] %v2928_v22  ;;  %v924_v35 = vmul.f32 %v2917_v53, %v2928_v22 }
 0x20b   : > { %v2936_v62 = vadd.f32 %v2800_v28, %v907_v61 }
 0x20c   : > { %v2938_v25 = vpop.xlane.xlu0 %804  ;;  %v2941_v39 = vadd.f32 %v2803_v32, %v924_v35 }
 0x20d   : > { %4516 = vst [vmem:[#allocation6_spill] sm:$0xff] %v2938_v25  ;;  %v2943_v26 = vpop.xlane.xlu1 %778  ;;  %v923_v46 = vmul.f32 %v2917_v53, %v2938_v25  ;;  %1068 = vmax.xlane.f32.xlu0 %v2936_v62 }
 0x20e   : > { %4517 = vst [vmem:[#allocation7_spill] sm:$0xff] %v2943_v26  ;;  %v910_v2 = vmul.f32 %v2917_v53, %v2943_v26  ;;  %1102 = vmax.xlane.f32.xlu1 %v2941_v39 }
 0x20f   : > { %v2952_v48 = vadd.f32 %v2808_v43, %v923_v46 }
 0x210   : > { %v2955_v29 = vadd.f32 %v2811_v47, %v910_v2  ;;  %v2959_v30 = vpop.xlane.xlu0 %776 }
 0x211   : > { %v2957_v52 = vpop.xlane.xlu1 %810  ;;  %4519 = vst [vmem:[#allocation9_spill] sm:$0xff] %v2959_v30  ;;  %1100 = vmax.xlane.f32.xlu0 %v2952_v48  ;;  %v909_v6 = vmul.f32 %v2917_v53, %v2959_v30 }
 0x212   : > { %4518 = vst [vmem:[#allocation8_spill] sm:$0xff] %v2957_v52  ;;  %v926_v56 = vmul.f32 %v2917_v53, %v2957_v52  ;;  %1074 = vmax.xlane.f32.xlu1 %v2955_v29 }
 0x213   : > { %v2971_v33 = vadd.f32 %v2819_v57, %v909_v6 }
 0x214   : > { %v2968_v58 = vadd.f32 %v2816_v54, %v926_v56 }
 0x215   : > { %v2973_v0 = vpop.xlane.xlu1 %782  ;;  %v2975_v34 = vpop.xlane.xlu0 %808  ;;  %1072 = vmax.xlane.f32.xlu0 %v2971_v33 }
 0x216   : > { %4520 = vst [vmem:[#allocation10_spill] sm:$0xff] %v2973_v0  ;;  %4521 = vst [vmem:[#allocation11_spill] sm:$0xff] %v2975_v34  ;;  %v912_v4 = vmul.f32 %v2917_v53, %v2973_v0  ;;  %v925_v10 = vmul.f32 %v2917_v53, %v2975_v34  ;;  %1106 = vmax.xlane.f32.xlu1 %v2968_v58 }
 0x218   : > { %v2984_v45 = vadd.f32 %v2824_v3, %v912_v4  ;;  %v2987_v37 = vadd.f32 %v2827_v7, %v925_v10 }
 0x219   : > { %v2989_v8 = vpop.xlane.xlu1 %814  ;;  %v2991_v38 = vpop.xlane.xlu0 %780 }
 0x21a   : > { %4522 = vst [vmem:[#allocation12_spill] sm:$0xff] %v2989_v8  ;;  %4523 = vst [vmem:[#allocation13_spill] sm:$0xff] %v2991_v38  ;;  %v928_v14 = vmul.f32 %v2917_v53, %v2989_v8  ;;  %v911_v27 = vmul.f32 %v2917_v53, %v2991_v38  ;;  %1078 = vmax.xlane.f32.xlu1 %v2984_v45  ;;  %1104 = vmax.xlane.f32.xlu0 %v2987_v37 }
 0x21c   : > { %v3000_v61 = vadd.f32 %v2832_v11, %v928_v14  ;;  %v3003_v35 = vadd.f32 %v2835_v49, %v911_v27 }
 0x21d   : > { %v3005_v46 = vpop.xlane.xlu1 %786  ;;  %v3007_v2 = vpop.xlane.xlu0 %812 }
 0x21e   : > { %4524 = vst [vmem:[#allocation14_spill] sm:$0xff] %v3005_v46  ;;  %4525 = vst [vmem:[#allocation15_spill] sm:$0xff] %v3007_v2  ;;  %v914_v56 = vmul.f32 %v2917_v53, %v3005_v46  ;;  %v927_v6 = vmul.f32 %v2917_v53, %v3007_v2  ;;  %1110 = vmax.xlane.f32.xlu1 %v3000_v61  ;;  %1076 = vmax.xlane.f32.xlu0 %v3003_v35 }
 0x220   : > { %v3016_v4 = vadd.f32 %v2840_v19, %v914_v56  ;;  %v3019_v10 = vadd.f32 %v2843_v20, %v927_v6 }
 0x221   : > { %v3021_v14 = vpop.xlane.xlu1 %818  ;;  %v3023_v27 = vpop.xlane.xlu0 %784 }
 0x222   : > { %4526 = vst [vmem:[#allocation16_spill] sm:$0xff] %v3021_v14  ;;  %4527 = vst [vmem:[#allocation17_spill] sm:$0xff] %v3023_v27  ;;  %v930_v46 = vmul.f32 %v2917_v53, %v3021_v14  ;;  %v913_v2 = vmul.f32 %v2917_v53, %v3023_v27  ;;  %1082 = vmax.xlane.f32.xlu1 %v3016_v4  ;;  %1108 = vmax.xlane.f32.xlu0 %v3019_v10 }
 0x224   : > { %v3032_v56 = vadd.f32 %v2848_v60, %v930_v46  ;;  %v3035_v6 = vadd.f32 %v2851_v31, %v913_v2 }
 0x225   : > { %v3037_v38 = vpop.xlane.xlu1 %790  ;;  %v3039_v8 = vpop.xlane.xlu0 %816 }
 0x226   : > { %4528 = vst [vmem:[#allocation18_spill] sm:$0xff] %v3037_v38  ;;  %4529 = vst [vmem:[#allocation19_spill] sm:$0xff] %v3039_v8  ;;  %v916_v14 = vmul.f32 %v2917_v53, %v3037_v38  ;;  %v929_v27 = vmul.f32 %v2917_v53, %v3039_v8  ;;  %1114 = vmax.xlane.f32.xlu1 %v3032_v56  ;;  %1080 = vmax.xlane.f32.xlu0 %v3035_v6 }
 0x228   : > { %v3048_v46 = vadd.f32 %v2856_v36, %v916_v14  ;;  %v3051_v2 = vadd.f32 %v2859_v1, %v929_v27 }
 0x229   : > { %v3053_v34 = vpop.xlane.xlu1 %822  ;;  %v3055_v0 = vpop.xlane.xlu0 %788 }
 0x22a   : > { %4530 = vst [vmem:[#allocation20_spill] sm:$0xff] %v3053_v34  ;;  %4531 = vst [vmem:[#allocation21_spill] sm:$0xff] %v3055_v0  ;;  %v932_v38 = vmul.f32 %v2917_v53, %v3053_v34  ;;  %v915_v8 = vmul.f32 %v2917_v53, %v3055_v0  ;;  %1086 = vmax.xlane.f32.xlu1 %v3048_v46  ;;  %1112 = vmax.xlane.f32.xlu0 %v3051_v2 }
 0x22c   : > { %v3064_v14 = vadd.f32 %v2864_v51, %v932_v38  ;;  %v3067_v27 = vadd.f32 %v2867_v5, %v915_v8 }
 0x22d   : > { %v3069_v30 = vpop.xlane.xlu1 %794  ;;  %v3071_v52 = vpop.xlane.xlu0 %820 }
 0x22e   : > { %4532 = vst [vmem:[#allocation22_spill] sm:$0xff] %v3069_v30  ;;  %4533 = vst [vmem:[#allocation23_spill] sm:$0xff] %v3071_v52  ;;  %v918_v34 = vmul.f32 %v2917_v53, %v3069_v30  ;;  %v931_v0 = vmul.f32 %v2917_v53, %v3071_v52  ;;  %1118 = vmax.xlane.f32.xlu1 %v3064_v14  ;;  %1084 = vmax.xlane.f32.xlu0 %v3067_v27 }
 0x230   : > { %v3080_v38 = vadd.f32 %v2872_v63, %v918_v34  ;;  %v3083_v8 = vadd.f32 %v2875_v9, %v931_v0 }
 0x231   : > { %v3085_v26 = vpop.xlane.xlu1 %826  ;;  %v3087_v25 = vpop.xlane.xlu0 %792 }
 0x232   : > { %4534 = vst [vmem:[#allocation24_spill] sm:$0xff] %v3083_v8  ;;  %4535 = vst [vmem:[#allocation25_spill] sm:$0xff] %v3085_v26  ;;  %v934_v30 = vmul.f32 %v2917_v53, %v3085_v26  ;;  %v917_v52 = vmul.f32 %v2917_v53, %v3087_v25  ;;  %1090 = vmax.xlane.f32.xlu1 %v3080_v38  ;;  %1116 = vmax.xlane.f32.xlu0 %v3083_v8 }
 0x233   : > { %4536 = vst [vmem:[#allocation26_spill] sm:$0xff] %v3087_v25 }
 0x234   : > { %v3096_v34 = vadd.f32 %v2880_v44, %v934_v30  ;;  %v3099_v0 = vadd.f32 %v2883_v13, %v917_v52 }
 0x235   : > { %v3101_v22 = vpop.xlane.xlu1 %798  ;;  %v3103_v21 = vpop.xlane.xlu0 %824 }
 0x236   : > { %4537 = vst [vmem:[#allocation27_spill] sm:$0xff] %v3096_v34  ;;  %4538 = vst [vmem:[#allocation28_spill] sm:$0xff] %v3099_v0  ;;  %v920_v26 = vmul.f32 %v2917_v53, %v3101_v22  ;;  %v933_v25 = vmul.f32 %v2917_v53, %v3103_v21  ;;  %1122 = vmax.xlane.f32.xlu1 %v3096_v34  ;;  %1088 = vmax.xlane.f32.xlu0 %v3099_v0 }
 0x237   : > { %4539 = vst [vmem:[#allocation29_spill] sm:$0xff] %v3101_v22  ;;  %4540 = vst [vmem:[#allocation30_spill] sm:$0xff] %v3103_v21 }
 0x238   : > { %v3112_v30 = vadd.f32 %v2887_v12, %v920_v26  ;;  %v3115_v52 = vadd.f32 %v2889_v50, %v933_v25 }
 0x239   : > { %v3117_v24 = vpop.xlane.xlu1 %830  ;;  %v3119_v8 = vpop.xlane.xlu0 %796 }
 0x23a   : > { %4541 = vst [vmem:[#allocation31_spill] sm:$0xff] %v3112_v30  ;;  %4542 = vst [vmem:[#allocation32_spill] sm:$0xff] %v3115_v52  ;;  %v936_v22 = vmul.f32 %v2917_v53, %v3117_v24  ;;  %v919_v21 = vmul.f32 %v2917_v53, %v3119_v8  ;;  %1094 = vmax.xlane.f32.xlu1 %v3112_v30  ;;  %1120 = vmax.xlane.f32.xlu0 %v3115_v52 }
 0x23b   : > { %4543 = vst [vmem:[#allocation33_spill] sm:$0xff] %v3117_v24  ;;  %4544 = vst [vmem:[#allocation34_spill] sm:$0xff] %v3119_v8 }
 0x23c   : > { %v3128_v26 = vadd.f32 %v2893_v40, %v936_v22  ;;  %v3131_v25 = vadd.f32 %v2895_v42, %v919_v21 }
 0x23d   : > { %v3133_v0 = vpop.xlane.xlu1 %802  ;;  %v3135_v34 = vpop.xlane.xlu0 %828 }
 0x23e   : > { %4545 = vst [vmem:[#allocation35_spill] sm:$0xff] %v3128_v26  ;;  %4546 = vst [vmem:[#allocation36_spill] sm:$0xff] %v3131_v25  ;;  %v922_v24 = vmul.f32 %v2917_v53, %v3133_v0  ;;  %v935_v8 = vmul.f32 %v2917_v53, %v3135_v34  ;;  %1126 = vmax.xlane.f32.xlu1 %v3128_v26  ;;  %1092 = vmax.xlane.f32.xlu0 %v3131_v25 }
 0x23f   : > { %4547 = vst [vmem:[#allocation37_spill] sm:$0xff] %v3133_v0  ;;  %4548 = vst [vmem:[#allocation38_spill] sm:$0xff] %v3135_v34 }
 0x240   : > { %v3144_v22 = vadd.f32 %v2899_v15, %v922_v24  ;;  %v3147_v21 = vadd.f32 %v2901_v16, %v935_v8 }
 0x241   : > { %v3149_v52 = vpop.xlane.xlu1 %834  ;;  %v3151_v30 = vpop.xlane.xlu0 %800 }
 0x242   : > { %4549 = vst [vmem:[#allocation39_spill] sm:$0xff] %v3144_v22  ;;  %4550 = vst [vmem:[#allocation40_spill] sm:$0xff] %v3147_v21  ;;  %v938_v0 = vmul.f32 %v2917_v53, %v3149_v52  ;;  %v921_v34 = vmul.f32 %v2917_v53, %v3151_v30  ;;  %1098 = vmax.xlane.f32.xlu1 %v3144_v22  ;;  %1124 = vmax.xlane.f32.xlu0 %v3147_v21  ;;  %v989_v22 = vsub.f32 1.0, %v2803_v32 }
 0x243   : > { %4551 = vst [vmem:[#allocation41_spill] sm:$0xff] %v3149_v52  ;;  %4552 = vst [vmem:[#allocation42_spill] sm:$0xff] %v3151_v30  ;;  %v972_v52 = vsub.f32 1.0, %v2800_v28 }
 0x244   : > { %v3160_v24 = vadd.f32 %v2905_v17, %v938_v0  ;;  %v3163_v8 = vadd.f32 %v2907_v55, %v921_v34  ;;  %v973_v0 = vsub.f32 1.0, %v2796_v23  ;;  %v3178_v34 = vcvt.s32.f32 %v2623_v41 }
 0x245   : > { %v3165_v25 = vpop.xlane.xlu0 %832 }
 0x246   : > { %4553 = vst [vmem:[#allocation43_spill] sm:$0xff] %v3160_v24  ;;  %4554 = vst [vmem:[#allocation44_spill] sm:$0xff] %v3163_v8  ;;  %v937_v26 = vmul.f32 %v2917_v53, %v3165_v25  ;;  %1130 = vmax.xlane.f32.xlu1 %v3160_v24  ;;  %1096 = vmax.xlane.f32.xlu0 %v3163_v8  ;;  %v1005_v21 = vmin.f32 %v973_v0, 0.99998474  ;;  %v1004_v53 = vmin.f32 %v972_v52, 0.99998474 }
 0x247   : > { %4555 = vst [vmem:[#allocation45_spill] sm:$0xff] %v3165_v25  ;;  %v975_v25 = vsub.f32 1.0, %v2811_v47  ;;  %v988_v8 = vsub.f32 1.0, %v2808_v43  ;;  %v991_v43 = vsub.f32 1.0, %v2816_v54 }
 0x248   : > { %v3172_v30 = vadd.f32 %v2911_v18, %v937_v26  ;;  %v3184_v26 = vadd.f32 %v1005_v21, %v3178_v34  ;;  %v3189_v0 = vadd.f32 %v1004_v53, %v3178_v34  ;;  %v990_v53 = vsub.f32 1.0, %v2827_v7 }
 0x249   : > { %v1007_v32 = vmin.f32 %v975_v25, 0.99998474  ;;  %v1020_v52 = vmin.f32 %v988_v8, 0.99998474 }
 0x24a   : > { %4556 = vst [vmem:[#allocation46_spill] sm:$0xff] %v3172_v30  ;;  %1128 = vmax.xlane.f32.xlu0 %v3172_v30  ;;  %v1021_v30 = vmin.f32 %v989_v22, 0.99998474  ;;  %4557 = vst [vmem:[#allocation47_spill] sm:$0xff] %v3189_v0  ;;  %v974_v22 = vsub.f32 1.0, %v2819_v57 }
 0x24b   : > { %v3201_v8 = vadd.f32 %v1007_v32, %v3178_v34  ;;  %v1023_v57 = vmin.f32 %v991_v43, 0.99998474  ;;  %v1022_v32 = vmin.f32 %v990_v53, 0.99998474 }
 0x24c   : > { %v3192_v47 = vadd.f32 %v1021_v30, %v3178_v34  ;;  %v3204_v30 = vadd.f32 %v1020_v52, %v3178_v34  ;;  %v976_v52 = vsub.f32 1.0, %v2835_v49 }
 0x24d   : > { %v3225_v49 = vadd.f32 %v1022_v32, %v3178_v34 }
 0x292   : > { %v1071_v24 = vpop.xlane.xlu1 %1070 }
 0x293   : > { %vm1133_vm2 = vcmp.eq.f32.partialorder %v2926_v59, %v1071_v24 }
 0x294   : > { %v1165_v23 = vsel %vm1133_vm2, %v3184_v26, 1e+09 }
 0x295   : > { %1198 = vmin.xlane.f32.xlu1 %v1165_v23  ;;  %v977_v23 = vsub.f32 1.0, %v2824_v3 }
 0x296   : > { %v1069_v28 = vpop.xlane.xlu0 %1068 }
 0x297   : > { %v1103_v41 = vpop.xlane.xlu1 %1102  ;;  %vm1132_vm3 = vcmp.eq.f32.partialorder %v2936_v62, %v1069_v28  ;;  %v1009_v3 = vmin.f32 %v977_v23, 0.99998474 }
 0x298   : > { %vm1149_vm4 = vcmp.eq.f32.partialorder %v2941_v39, %v1103_v41  ;;  %v1164_v21 = vsel %vm1132_vm3, %v3189_v0, 1e+09  ;;  %v1006_v41 = vmin.f32 %v974_v22, 0.99998474  ;;  %v3214_v0 = vadd.f32 %v1023_v57, %v3178_v34 }
 0x299   : > { %v1181_v24 = vsel %vm1149_vm4, %v3192_v47, 1e+09  ;;  %1196 = vmin.xlane.f32.xlu0 %v1164_v21  ;;  %v993_v22 = vsub.f32 1.0, %v2832_v11  ;;  %v3228_v23 = vadd.f32 %v1009_v3, %v3178_v34 }
 0x29a   : > { %1230 = vmin.xlane.f32.xlu1 %v1181_v24  ;;  %v1101_v25 = vpop.xlane.xlu0 %1100  ;;  %v3217_v43 = vadd.f32 %v1006_v41, %v3178_v34 }
 0x29b   : > { %v1075_v54 = vpop.xlane.xlu1 %1074  ;;  %vm1148_vm5 = vcmp.eq.f32.partialorder %v2952_v48, %v1101_v25  ;;  %v1025_v11 = vmin.f32 %v993_v22, 0.99998474 }
 0x29c   : > { %vm1135_vm6 = vcmp.eq.f32.partialorder %v2955_v29, %v1075_v54  ;;  %v1180_v28 = vsel %vm1148_vm5, %v3204_v30, 1e+09  ;;  %v1008_v54 = vmin.f32 %v976_v52, 0.99998474 }
 0x29d   : > { %v1167_v21 = vsel %vm1135_vm6, %v3201_v8, 1e+09  ;;  %1228 = vmin.xlane.f32.xlu0 %v1180_v28  ;;  %v979_v28 = vsub.f32 1.0, %v2840_v19  ;;  %v3241_v19 = vadd.f32 %v1025_v11, %v3178_v34 }
 0x29e   : > { %1202 = vmin.xlane.f32.xlu1 %v1167_v21  ;;  %v1073_v7 = vpop.xlane.xlu0 %1072  ;;  %v992_v21 = vsub.f32 1.0, %v2843_v20  ;;  %v3237_v52 = vadd.f32 %v1008_v54, %v3178_v34 }
 0x29f   : > { %v1107_v24 = vpop.xlane.xlu1 %1106  ;;  %vm1134_vm8 = vcmp.eq.f32.partialorder %v2971_v33, %v1073_v7  ;;  %v978_v7 = vsub.f32 1.0, %v2851_v31  ;;  %v1011_v20 = vmin.f32 %v979_v28, 0.99998474 }
 0x2a0   : > { %vm1151_vm7 = vcmp.eq.f32.partialorder %v2968_v58, %v1107_v24  ;;  %v1166_v53 = vsel %vm1134_vm8, %v3217_v43, 1e+09 }
 0x2a1   : > { %v1183_v25 = vsel %vm1151_vm7, %v3214_v0, 1e+09  ;;  %1200 = vmin.xlane.f32.xlu0 %v1166_v53  ;;  %v995_v53 = vsub.f32 1.0, %v2848_v60  ;;  %v1010_v31 = vmin.f32 %v978_v7, 0.99998474  ;;  %v3250_v28 = vadd.f32 %v1011_v20, %v3178_v34 }
 0x2a2   : > { %1234 = vmin.xlane.f32.xlu1 %v1183_v25  ;;  %v1024_v25 = vmin.f32 %v992_v21, 0.99998474 }
 0x2a3   : > { %v1079_v57 = vpop.xlane.xlu1 %1078  ;;  %v1105_v41 = vpop.xlane.xlu0 %1104  ;;  %v1027_v21 = vmin.f32 %v995_v53, 0.99998474 }
 0x2a4   : > { %vm1137_vm9 = vcmp.eq.f32.partialorder %v2984_v45, %v1079_v57  ;;  %vm1150_vm10 = vcmp.eq.f32.partialorder %v2987_v37, %v1105_v41  ;;  %v994_v41 = vsub.f32 1.0, %v2859_v1  ;;  %v3253_v60 = vadd.f32 %v1024_v25, %v3178_v34 }
 0x2a5   : > { %v1169_v24 = vsel %vm1137_vm9, %v3228_v23, 1e+09  ;;  %v1182_v32 = vsel %vm1150_vm10, %v3225_v49, 1e+09  ;;  %v3261_v1 = vadd.f32 %v1010_v31, %v3178_v34  ;;  %v3264_v53 = vadd.f32 %v1027_v21, %v3178_v34 }
 0x2a6   : > { %1206 = vmin.xlane.f32.xlu1 %v1169_v24  ;;  %1232 = vmin.xlane.f32.xlu0 %v1182_v32  ;;  %v981_v32 = vsub.f32 1.0, %v2856_v36 }
 0x2a7   : > { %v1111_v3 = vpop.xlane.xlu1 %1110  ;;  %v1077_v22 = vpop.xlane.xlu0 %1076 }
 0x2a8   : > { %vm1153_vm11 = vcmp.eq.f32.partialorder %v3000_v61, %v1111_v3  ;;  %vm1136_vm12 = vcmp.eq.f32.partialorder %v3003_v35, %v1077_v22  ;;  %v1026_v22 = vmin.f32 %v994_v41, 0.99998474  ;;  %v1013_v36 = vmin.f32 %v981_v32, 0.99998474 }
 0x2a9   : > { %v1185_v57 = vsel %vm1153_vm11, %v3241_v19, 1e+09  ;;  %v1168_v54 = vsel %vm1136_vm12, %v3237_v52, 1e+09 }
 0x2aa   : > { %1238 = vmin.xlane.f32.xlu1 %v1185_v57  ;;  %1204 = vmin.xlane.f32.xlu0 %v1168_v54  ;;  %v997_v57 = vsub.f32 1.0, %v2864_v51  ;;  %v980_v54 = vsub.f32 1.0, %v2867_v5  ;;  %v3273_v41 = vadd.f32 %v1026_v22, %v3178_v34  ;;  %v3277_v51 = vadd.f32 %v1013_v36, %v3178_v34 }
 0x2ab   : > { %v1083_v24 = vpop.xlane.xlu1 %1082  ;;  %v1109_v11 = vpop.xlane.xlu0 %1108 }
 0x2ac   : > { %vm1139_vm13 = vcmp.eq.f32.partialorder %v3016_v4, %v1083_v24  ;;  %vm1152_vm14 = vcmp.eq.f32.partialorder %v3019_v10, %v1109_v11  ;;  %4558 = vst [vmem:[#allocation48_spill] sm:$0xff] %v3273_v41  ;;  %v996_v11 = vsub.f32 1.0, %v2875_v9  ;;  %v1029_v5 = vmin.f32 %v997_v57, 0.99998474 }
 0x2ad   : > { %v1171_v3 = vsel %vm1139_vm13, %v3250_v28, 1e+09  ;;  %v1184_v7 = vsel %vm1152_vm14, %v3253_v60, 1e+09 }
 0x2ae   : > { %1210 = vmin.xlane.f32.xlu1 %v1171_v3  ;;  %1236 = vmin.xlane.f32.xlu0 %v1184_v7  ;;  %v1012_v3 = vmin.f32 %v980_v54, 0.99998474  ;;  %v983_v7 = vsub.f32 1.0, %v2872_v63  ;;  %v1028_v9 = vmin.f32 %v996_v11, 0.99998474  ;;  %v3286_v57 = vadd.f32 %v1029_v5, %v3178_v34 }
 0x2af   : > { %v1115_v20 = vpop.xlane.xlu1 %1114  ;;  %v1081_v25 = vpop.xlane.xlu0 %1080 }
 0x2b0   : > { %vm1155_vm15 = vcmp.eq.f32.partialorder %v3032_v56, %v1115_v20  ;;  %vm1138_vm0 = vcmp.eq.f32.partialorder %v3035_v6, %v1081_v25  ;;  %v982_v25 = vsub.f32 1.0, %v2883_v13  ;;  %4559 = vst [vmem:[#allocation49_spill] sm:$0xff] %v3286_v57  ;;  %v3289_v63 = vadd.f32 %v1012_v3, %v3178_v34 }
 0x2b1   : > { %v1187_v24 = vsel %vm1155_vm15, %v3264_v53, 1e+09  ;;  %v1170_v31 = vsel %vm1138_vm0, %v3261_v1, 1e+09  ;;  %v1015_v54 = vmin.f32 %v983_v7, 0.99998474  ;;  %v3297_v13 = vadd.f32 %v1028_v9, %v3178_v34 }
 0x2b2   : > { %1242 = vmin.xlane.f32.xlu1 %v1187_v24  ;;  %1208 = vmin.xlane.f32.xlu0 %v1170_v31  ;;  %4560 = vst [vmem:[#allocation50_spill] sm:$0xff] %v3289_v63  ;;  %v999_v31 = vsub.f32 1.0, %v2880_v44 }
 0x2b3   : > { %v1087_v21 = vpop.xlane.xlu1 %1086  ;;  %v1113_v32 = vpop.xlane.xlu0 %1112  ;;  %4561 = vst [vmem:[#allocation51_spill] sm:$0xff] %v3297_v13  ;;  %v3300_v7 = vadd.f32 %v1015_v54, %v3178_v34  ;;  %v984_v54 = vsub.f32 1.0, %v2895_v42 }
 0x2b4   : > { %vm1141_vm1 = vcmp.eq.f32.partialorder %v3048_v46, %v1087_v21  ;;  %vm1154_vm2 = vcmp.eq.f32.partialorder %v3051_v2, %v1113_v32  ;;  %v1014_v32 = vmin.f32 %v982_v25, 0.99998474  ;;  %v1031_v44 = vmin.f32 %v999_v31, 0.99998474 }
 0x2b5   : > { %v1173_v20 = vsel %vm1141_vm1, %v3277_v51, 1e+09  ;;  %v1186_v22 = vsel %vm1154_vm2, %v3273_v41, 1e+09  ;;  %4562 = vst [vmem:[#allocation52_spill] sm:$0xff] %v3300_v7 }
 0x2b6   : > { %1214 = vmin.xlane.f32.xlu1 %v1173_v20  ;;  %1240 = vmin.xlane.f32.xlu0 %v1186_v22  ;;  %v985_v20 = vsub.f32 1.0, %v2887_v12  ;;  %v998_v22 = vsub.f32 1.0, %v2889_v50  ;;  %v3309_v25 = vadd.f32 %v1014_v32, %v3178_v34  ;;  %v3313_v12 = vadd.f32 %v1031_v44, %v3178_v34 }
 0x2b7   : > { %v1119_v24 = vpop.xlane.xlu1 %1118  ;;  %v1085_v36 = vpop.xlane.xlu0 %1084  ;;  %v1016_v42 = vmin.f32 %v984_v54, 0.99998474 }
 0x2b8   : > { %vm1157_vm3 = vcmp.eq.f32.partialorder %v3064_v14, %v1119_v24  ;;  %vm1140_vm4 = vcmp.eq.f32.partialorder %v3067_v27, %v1085_v36  ;;  %v4563_v24 = vld [vmem:[#allocation24_spill] sm:$0xff]  ;;  %4565 = vst [vmem:[#allocation53_spill] sm:$0xff] %v3313_v12  ;;  %v1017_v50 = vmin.f32 %v985_v20, 0.99998474 }
 0x2b9   : > { %v1189_v21 = vsel %vm1157_vm3, %v3286_v57, 1e+09  ;;  %v1172_v11 = vsel %vm1140_vm4, %v3289_v63, 1e+09  ;;  %4564 = vst [vmem:[#allocation24_spill] sm:$0xff] %v3309_v25  ;;  %v4592_v63 = vld [vmem:[#allocation2_spill] sm:$0xff] }
 0x2ba   : > { %1246 = vmin.xlane.f32.xlu1 %v1189_v21  ;;  %1212 = vmin.xlane.f32.xlu0 %v1172_v11  ;;  %v1030_v11 = vmin.f32 %v998_v22, 0.99998474  ;;  %v3322_v20 = vadd.f32 %v1017_v50, %v3178_v34 }
 0x2bb   : > { %v1091_v5 = vpop.xlane.xlu1 %1090  ;;  %v1117_v3 = vpop.xlane.xlu0 %1116 }
 0x2bc   : > { %vm1143_vm5 = vcmp.eq.f32.partialorder %v3080_v38, %v1091_v5  ;;  %vm1156_vm6 = vcmp.eq.f32.partialorder %v4563_v24, %v1117_v3  ;;  %v1001_v5 = vsub.f32 1.0, %v2893_v40  ;;  %v4566_v3 = vld [vmem:[#allocation27_spill] sm:$0xff]  ;;  %v3325_v40 = vadd.f32 %v1030_v11, %v3178_v34 }
 0x2bd   : > { %v1175_v36 = vsel %vm1143_vm5, %v3300_v7, 1e+09  ;;  %v1188_v9 = vsel %vm1156_vm6, %v3297_v13, 1e+09  ;;  %v4567_v7 = vld [vmem:[#allocation28_spill] sm:$0xff]  ;;  %4568 = vst [vmem:[#allocation27_spill] sm:$0xff] %v3322_v20 }
 0x2be   : > { %1218 = vmin.xlane.f32.xlu1 %v1175_v36  ;;  %1244 = vmin.xlane.f32.xlu0 %v1188_v9  ;;  %v1000_v9 = vsub.f32 1.0, %v2901_v16  ;;  %4569 = vst [vmem:[#allocation28_spill] sm:$0xff] %v3325_v40  ;;  %v1033_v22 = vmin.f32 %v1001_v5, 0.99998474  ;;  %v3333_v16 = vadd.f32 %v1016_v42, %v3178_v34 }
 0x2bf   : > { %v1123_v31 = vpop.xlane.xlu1 %1122  ;;  %v1089_v21 = vpop.xlane.xlu0 %1088 }
 0x2c0   : > { %vm1159_vm7 = vcmp.eq.f32.partialorder %v4566_v3, %v1123_v31  ;;  %vm1142_vm8 = vcmp.eq.f32.partialorder %v4567_v7, %v1089_v21  ;;  %v987_v31 = vsub.f32 1.0, %v2899_v15  ;;  %v4570_v21 = vld [vmem:[#allocation31_spill] sm:$0xff]  ;;  %v1032_v50 = vmin.f32 %v1000_v9, 0.99998474 }
 0x2c1   : > { %v1191_v36 = vsel %vm1159_vm7, %v3313_v12, 1e+09  ;;  %v1174_v32 = vsel %vm1142_vm8, %v3309_v25, 1e+09  ;;  %v4571_v12 = vld [vmem:[#allocation32_spill] sm:$0xff]  ;;  %4572 = vst [vmem:[#allocation31_spill] sm:$0xff] %v3333_v16  ;;  %v3336_v5 = vadd.f32 %v1033_v22, %v3178_v34 }
 0x2c2   : > { %1250 = vmin.xlane.f32.xlu1 %v1191_v36  ;;  %1216 = vmin.xlane.f32.xlu0 %v1174_v32  ;;  %v1019_v15 = vmin.f32 %v987_v31, 0.99998474  ;;  %v4574_v25 = vld [vmem:[#allocation35_spill] sm:$0xff]  ;;  %v3345_v9 = vadd.f32 %v1032_v50, %v3178_v34 }
 0x2c3   : > { %v1095_v13 = vpop.xlane.xlu1 %1094  ;;  %v1121_v44 = vpop.xlane.xlu0 %1120  ;;  %4573 = vst [vmem:[#allocation32_spill] sm:$0xff] %v3336_v5 }
 0x2c4   : > { %vm1145_vm9 = vcmp.eq.f32.partialorder %v4570_v21, %v1095_v13  ;;  %vm1158_vm10 = vcmp.eq.f32.partialorder %v4571_v12, %v1121_v44  ;;  %v1003_v13 = vsub.f32 1.0, %v2905_v17  ;;  %v986_v44 = vsub.f32 1.0, %v2907_v55  ;;  %4576 = vst [vmem:[#allocation35_spill] sm:$0xff] %v3345_v9 }
 0x2c5   : > { %v1177_v36 = vsel %vm1145_vm9, %v3322_v20, 1e+09  ;;  %v1190_v54 = vsel %vm1158_vm10, %v3325_v40, 1e+09  ;;  %v4575_v20 = vld [vmem:[#allocation36_spill] sm:$0xff]  ;;  %v3348_v31 = vadd.f32 %v1019_v15, %v3178_v34  ;;  %v4578_v40 = vld [vmem:[#allocation39_spill] sm:$0xff] }
 0x2c6   : > { %1222 = vmin.xlane.f32.xlu1 %v1177_v36  ;;  %1248 = vmin.xlane.f32.xlu0 %v1190_v54  ;;  %v1035_v17 = vmin.f32 %v1003_v13, 0.99998474  ;;  %v1018_v55 = vmin.f32 %v986_v44, 0.99998474 }
 0x2c7   : > { %v1127_v32 = vpop.xlane.xlu1 %1126  ;;  %v1093_v11 = vpop.xlane.xlu0 %1092  ;;  %4577 = vst [vmem:[#allocation36_spill] sm:$0xff] %v3348_v31 }
 0x2c8   : > { %vm1161_vm11 = vcmp.eq.f32.partialorder %v4574_v25, %v1127_v32  ;;  %vm1144_vm12 = vcmp.eq.f32.partialorder %v4575_v20, %v1093_v11  ;;  %v1002_v32 = vsub.f32 1.0, %v2911_v18  ;;  %v4579_v11 = vld [vmem:[#allocation40_spill] sm:$0xff]  ;;  %v3356_v50 = vadd.f32 %v1035_v17, %v3178_v34  ;;  %v4582_v18 = vld [vmem:[#allocation43_spill] sm:$0xff] }
 0x2c9   : > { %v1193_v36 = vsel %vm1161_vm11, %v3336_v5, 1e+09  ;;  %v1176_v42 = vsel %vm1144_vm12, %v3333_v16, 1e+09  ;;  %v3359_v13 = vadd.f32 %v1018_v55, %v3178_v34 }
 0x2ca   : > { %1254 = vmin.xlane.f32.xlu1 %v1193_v36  ;;  %1220 = vmin.xlane.f32.xlu0 %v1176_v42  ;;  %4580 = vst [vmem:[#allocation39_spill] sm:$0xff] %v3356_v50  ;;  %v1034_v44 = vmin.f32 %v1002_v32, 0.99998474 }
 0x2cb   : > { %v1099_v22 = vpop.xlane.xlu1 %1098  ;;  %v1125_v54 = vpop.xlane.xlu0 %1124  ;;  %4581 = vst [vmem:[#allocation40_spill] sm:$0xff] %v3359_v13 }
 0x2cc   : > { %vm1147_vm13 = vcmp.eq.f32.partialorder %v4578_v40, %v1099_v22  ;;  %vm1160_vm14 = vcmp.eq.f32.partialorder %v4579_v11, %v1125_v54  ;;  %v4583_v22 = vld [vmem:[#allocation44_spill] sm:$0xff] }
 0x2cd   : > { %v1179_v16 = vsel %vm1147_vm13, %v3348_v31, 1e+09  ;;  %v1192_v36 = vsel %vm1160_vm14, %v3345_v9, 1e+09 }
 0x2ce   : > { %1226 = vmin.xlane.f32.xlu1 %v1179_v16  ;;  %1252 = vmin.xlane.f32.xlu0 %v1192_v36  ;;  %v3366_v16 = vadd.f32 %v1034_v44, %v3178_v34  ;;  %v4585_v36 = vld [vmem:[#allocation46_spill] sm:$0xff] }
 0x2cf   : > { %v1131_v42 = vpop.xlane.xlu1 %1130  ;;  %v1097_v15 = vpop.xlane.xlu0 %1096 }
 0x2d0   : > { %vm1163_vm15 = vcmp.eq.f32.partialorder %v4582_v18, %v1131_v42  ;;  %vm1146_vm0 = vcmp.eq.f32.partialorder %v4583_v22, %v1097_v15  ;;  %4584 = vst [vmem:[#allocation43_spill] sm:$0xff] %v3366_v16 }
 0x2d1   : > { %v1195_v54 = vsel %vm1163_vm15, %v3356_v50, 1e+09  ;;  %v1178_v31 = vsel %vm1146_vm0, %v3359_v13, 1e+09 }
 0x2d2   : > { %1258 = vmin.xlane.f32.xlu1 %v1195_v54  ;;  %1224 = vmin.xlane.f32.xlu0 %v1178_v31 }
 0x2d3   : > { %v1129_v17 = vpop.xlane.xlu0 %1128 }
 0x2d4   : > { %vm1162_vm1 = vcmp.eq.f32.partialorder %v4585_v36, %v1129_v17 }
 0x2d5   : > { %v1194_v55 = vsel %vm1162_vm1, %v3366_v16, 1e+09 }
 0x2d6   : > { %1256 = vmin.xlane.f32.xlu0 %v1194_v55 }
 0x31e   : > { %v1199_v32 = vpop.xlane.xlu1 %1198 }
 0x31f   : > { %v1261_v9 = vfloor.f32 %v1199_v32 }
 0x321   : > { %v3370_v42 = vtrunc.f32 %v1261_v9  ;;  %v3372_v15 = vsub.f32 %v1199_v32, %v1261_v9 }
 0x322   : > { %v1197_v50 = vpop.xlane.xlu0 %1196 }
 0x323   : > { %4586 = vst [vmem:[#allocation44_spill] sm:$0xff] %v3370_v42  ;;  %4587 = vst [vmem:[#allocation46_spill] sm:$0xff] %v3372_v15  ;;  %v1231_v5 = vpop.xlane.xlu1 %1230  ;;  %v1260_v13 = vfloor.f32 %v1197_v50  ;;  %v4463_v31 = vcvt.f32.s32 %v3370_v42 }
 0x324   : > { %v1277_v54 = vfloor.f32 %v1231_v5 }
 0x325   : > { %v3375_v34 = vtrunc.f32 %v1260_v13  ;;  %v3377_v44 = vsub.f32 %v1197_v50, %v1260_v13  ;;  %vm1421_vm2 = vcmp.eq.s32.totalorder %v4592_v63, %v4463_v31 }
 0x326   : > { %v3379_v17 = vtrunc.f32 %v1277_v54  ;;  %v3381_v16 = vsub.f32 %v1231_v5, %v1277_v54  ;;  %v1229_v55 = vpop.xlane.xlu0 %1228  ;;  %v3388_v57 = vsel %vm1421_vm2, -inf, %v2926_v59 }
 0x327   : > { %4588 = vst [vmem:[#allocation54_spill] sm:$0xff] %v3375_v34  ;;  %4589 = vst [vmem:[#allocation55_spill] sm:$0xff] %v3377_v44  ;;  %v4465_v9 = vcvt.f32.s32 %v3375_v34  ;;  %v1203_v32 = vpop.xlane.xlu1 %1202  ;;  %v1276_v15 = vfloor.f32 %v1229_v55  ;;  %1486 = vmax.xlane.f32.xlu1 %v3388_v57 }
 0x328   : > { %4590 = vst [vmem:[#allocation56_spill] sm:$0xff] %v3379_v17  ;;  %4591 = vst [vmem:[#allocation57_spill] sm:$0xff] %v3381_v16  ;;  %v4467_v41 = vcvt.f32.s32 %v3379_v17  ;;  %v1263_v50 = vfloor.f32 %v1203_v32 }
 0x329   : > { %v3392_v13 = vtrunc.f32 %v1276_v15  ;;  %v3394_v5 = vsub.f32 %v1229_v55, %v1276_v15  ;;  %vm1420_vm3 = vcmp.eq.s32.totalorder %v4592_v63, %v4465_v9 }
 0x32a   : > { %v3399_v54 = vtrunc.f32 %v1263_v50  ;;  %v3401_v31 = vsub.f32 %v1203_v32, %v1263_v50  ;;  %vm1437_vm4 = vcmp.eq.s32.totalorder %v4592_v63, %v4467_v41  ;;  %v1201_v44 = vpop.xlane.xlu0 %1200  ;;  %v3411_v15 = vsel %vm1420_vm3, -inf, %v2936_v62 }
 0x32b   : > { %4593 = vst [vmem:[#allocation2_spill] sm:$0xff] %v3392_v13  ;;  %4594 = vst [vmem:[#allocation58_spill] sm:$0xff] %v3394_v5  ;;  %v4470_v59 = vcvt.f32.s32 %v3392_v13  ;;  %v1235_v42 = vpop.xlane.xlu1 %1234  ;;  %v3408_v16 = vsel %vm1437_vm4, -inf, %v2941_v39  ;;  %v1262_v34 = vfloor.f32 %v1201_v44  ;;  %1484 = vmax.xlane.f32.xlu0 %v3411_v15 }
 0x32c   : > { %4595 = vst [vmem:[#allocation59_spill] sm:$0xff] %v3399_v54  ;;  %4596 = vst [vmem:[#allocation60_spill] sm:$0xff] %v3401_v31  ;;  %v1279_v9 = vfloor.f32 %v1235_v42  ;;  %1518 = vmax.xlane.f32.xlu1 %v3408_v16  ;;  %v4601_v17 = vcvt.f32.s32 %v3399_v54 }
 0x32d   : > { %vm1436_vm5 = vcmp.eq.s32.totalorder %v4592_v63, %v4470_v59  ;;  %v3423_v39 = vtrunc.f32 %v1262_v34  ;;  %v3425_v62 = vsub.f32 %v1201_v44, %v1262_v34 }
 0x32e   : > { %v3419_v32 = vtrunc.f32 %v1279_v9  ;;  %v3421_v50 = vsub.f32 %v1235_v42, %v1279_v9  ;;  %vm1423_vm6 = vcmp.eq.s32.totalorder %v4592_v63, %v4601_v17  ;;  %v3431_v31 = vsel %vm1436_vm5, -inf, %v2952_v48 }
 0x32f   : > { %4599 = vst [vmem:[#allocation63_spill] sm:$0xff] %v3423_v39  ;;  %4600 = vst [vmem:[#allocation64_spill] sm:$0xff] %v3425_v62  ;;  %v1207_v41 = vpop.xlane.xlu1 %1206  ;;  %v1233_v55 = vpop.xlane.xlu0 %1232  ;;  %1516 = vmax.xlane.f32.xlu0 %v3431_v31  ;;  %v3437_v34 = vsel %vm1423_vm6, -inf, %v2955_v29 }
 0x330   : > { %4597 = vst [vmem:[#allocation61_spill] sm:$0xff] %v3419_v32  ;;  %4598 = vst [vmem:[#allocation62_spill] sm:$0xff] %v3421_v50  ;;  %v4472_v13 = vcvt.f32.s32 %v3419_v32  ;;  %v1265_v59 = vfloor.f32 %v1207_v41  ;;  %v1278_v9 = vfloor.f32 %v1233_v55  ;;  %1490 = vmax.xlane.f32.xlu1 %v3437_v34 }
 0x332   : > { %v3439_v44 = vtrunc.f32 %v1265_v59  ;;  %v3441_v62 = vsub.f32 %v1207_v41, %v1265_v59  ;;  %vm1439_vm7 = vcmp.eq.s32.totalorder %v4592_v63, %v4472_v13  ;;  %v3447_v48 = vtrunc.f32 %v1278_v9 }
 0x333   : > { %v3449_v17 = vsub.f32 %v1233_v55, %v1278_v9  ;;  %v1239_v54 = vpop.xlane.xlu1 %1238  ;;  %v1205_v42 = vpop.xlane.xlu0 %1204  ;;  %v3452_v50 = vsel %vm1439_vm7, -inf, %v2968_v58 }
 0x334   : > { %4602 = vst [vmem:[#allocation65_spill] sm:$0xff] %v3439_v44  ;;  %4603 = vst [vmem:[#allocation66_spill] sm:$0xff] %v3441_v62  ;;  %v1281_v5 = vfloor.f32 %v1239_v54  ;;  %v1264_v41 = vfloor.f32 %v1205_v42  ;;  %v4606_v62 = vcvt.f32.s32 %v3423_v39  ;;  %1522 = vmax.xlane.f32.xlu1 %v3452_v50  ;;  %v4611_v59 = vcvt.f32.s32 %v3439_v44 }
 0x335   : > { %4604 = vst [vmem:[#allocation67_spill] sm:$0xff] %v3447_v48  ;;  %4605 = vst [vmem:[#allocation68_spill] sm:$0xff] %v3449_v17 }
 0x336   : > { %vm1422_vm8 = vcmp.eq.s32.totalorder %v4592_v63, %v4606_v62  ;;  %v3459_v13 = vtrunc.f32 %v1281_v5  ;;  %v3461_v32 = vsub.f32 %v1239_v54, %v1281_v5  ;;  %v3463_v55 = vtrunc.f32 %v1264_v41 }
 0x337   : > { %v3466_v58 = vsub.f32 %v1205_v42, %v1264_v41  ;;  %v3469_v9 = vsel %vm1422_vm8, -inf, %v2971_v33  ;;  %v1211_v29 = vpop.xlane.xlu1 %1210  ;;  %v1237_v17 = vpop.xlane.xlu0 %1236  ;;  %vm1425_vm9 = vcmp.eq.s32.totalorder %v4592_v63, %v4611_v59  ;;  %v4612_v33 = vcvt.f32.s32 %v3447_v48 }
 0x338   : > { %4607 = vst [vmem:[#allocation69_spill] sm:$0xff] %v3459_v13  ;;  %4608 = vst [vmem:[#allocation70_spill] sm:$0xff] %v3461_v32  ;;  %1488 = vmax.xlane.f32.xlu0 %v3469_v9  ;;  %v1267_v5 = vfloor.f32 %v1211_v29  ;;  %v1280_v39 = vfloor.f32 %v1237_v17  ;;  %v3478_v42 = vsel %vm1425_vm9, -inf, %v2984_v45  ;;  %v4617_v32 = vcvt.f32.s32 %v3459_v13 }
 0x339   : > { %4609 = vst [vmem:[#allocation71_spill] sm:$0xff] %v3463_v55  ;;  %4610 = vst [vmem:[#allocation72_spill] sm:$0xff] %v3466_v58  ;;  %vm1438_vm10 = vcmp.eq.s32.totalorder %v4592_v63, %v4612_v33  ;;  %1494 = vmax.xlane.f32.xlu1 %v3478_v42 }
 0x33a   : > { %v3483_v41 = vtrunc.f32 %v1267_v5  ;;  %v3485_v44 = vsub.f32 %v1211_v29, %v1267_v5  ;;  %v3489_v59 = vsel %vm1438_vm10, -inf, %v2987_v37  ;;  %v3491_v62 = vtrunc.f32 %v1280_v39 }
 0x33b   : > { %v3493_v54 = vsub.f32 %v1237_v17, %v1280_v39  ;;  %v1243_v58 = vpop.xlane.xlu1 %1242  ;;  %v1209_v45 = vpop.xlane.xlu0 %1208  ;;  %vm1441_vm11 = vcmp.eq.s32.totalorder %v4592_v63, %v4617_v32  ;;  %v4618_v39 = vcvt.f32.s32 %v3463_v55 }
 0x33c   : > { %4613 = vst [vmem:[#allocation73_spill] sm:$0xff] %v3483_v41  ;;  %4614 = vst [vmem:[#allocation74_spill] sm:$0xff] %v3485_v44  ;;  %1520 = vmax.xlane.f32.xlu0 %v3489_v59  ;;  %v1283_v29 = vfloor.f32 %v1243_v58  ;;  %v1266_v5 = vfloor.f32 %v1209_v45  ;;  %v3502_v37 = vsel %vm1441_vm11, -inf, %v3000_v61  ;;  %v4623_v44 = vcvt.f32.s32 %v3483_v41 }
 0x33d   : > { %4615 = vst [vmem:[#allocation75_spill] sm:$0xff] %v3491_v62  ;;  %4616 = vst [vmem:[#allocation76_spill] sm:$0xff] %v3493_v54  ;;  %vm1424_vm12 = vcmp.eq.s32.totalorder %v4592_v63, %v4618_v39  ;;  %1526 = vmax.xlane.f32.xlu1 %v3502_v37 }
 0x33e   : > { %v3507_v17 = vtrunc.f32 %v1283_v29  ;;  %v3509_v13 = vsub.f32 %v1243_v58, %v1283_v29  ;;  %v3511_v32 = vtrunc.f32 %v1266_v5  ;;  %v3514_v33 = vsub.f32 %v1209_v45, %v1266_v5 }
 0x33f   : > { %v3517_v54 = vsel %vm1424_vm12, -inf, %v3003_v35  ;;  %v1215_v48 = vpop.xlane.xlu1 %1214  ;;  %v1241_v61 = vpop.xlane.xlu0 %1240  ;;  %vm1427_vm13 = vcmp.eq.s32.totalorder %v4592_v63, %v4623_v44  ;;  %v4624_v35 = vcvt.f32.s32 %v3491_v62 }
 0x340   : > { %4619 = vst [vmem:[#allocation77_spill] sm:$0xff] %v3507_v17  ;;  %4620 = vst [vmem:[#allocation78_spill] sm:$0xff] %v3509_v13  ;;  %1492 = vmax.xlane.f32.xlu0 %v3517_v54  ;;  %v1269_v58 = vfloor.f32 %v1215_v48  ;;  %v1282_v55 = vfloor.f32 %v1241_v61  ;;  %v3526_v45 = vsel %vm1427_vm13, -inf, %v3016_v4  ;;  %v4629_v13 = vcvt.f32.s32 %v3507_v17 }
 0x341   : > { %4621 = vst [vmem:[#allocation79_spill] sm:$0xff] %v3511_v32  ;;  %4622 = vst [vmem:[#allocation80_spill] sm:$0xff] %v3514_v33  ;;  %vm1440_vm14 = vcmp.eq.s32.totalorder %v4592_v63, %v4624_v35  ;;  %1498 = vmax.xlane.f32.xlu1 %v3526_v45 }
 0x342   : > { %v3531_v5 = vtrunc.f32 %v1269_v58  ;;  %v3533_v41 = vsub.f32 %v1215_v48, %v1269_v58  ;;  %v3537_v44 = vsel %vm1440_vm14, -inf, %v3019_v10  ;;  %v3539_v39 = vtrunc.f32 %v1282_v55 }
 0x343   : > { %v3541_v29 = vsub.f32 %v1241_v61, %v1282_v55  ;;  %v1247_v33 = vpop.xlane.xlu1 %1246  ;;  %v1213_v4 = vpop.xlane.xlu0 %1212  ;;  %vm1443_vm15 = vcmp.eq.s32.totalorder %v4592_v63, %v4629_v13  ;;  %v4630_v55 = vcvt.f32.s32 %v3511_v32 }
 0x344   : > { %4625 = vst [vmem:[#allocation81_spill] sm:$0xff] %v3531_v5  ;;  %4626 = vst [vmem:[#allocation82_spill] sm:$0xff] %v3533_v41  ;;  %1524 = vmax.xlane.f32.xlu0 %v3537_v44  ;;  %v1285_v48 = vfloor.f32 %v1247_v33  ;;  %v1268_v58 = vfloor.f32 %v1213_v4  ;;  %v3550_v10 = vsel %vm1443_vm15, -inf, %v3032_v56  ;;  %v4635_v41 = vcvt.f32.s32 %v3531_v5 }
 0x345   : > { %4627 = vst [vmem:[#allocation83_spill] sm:$0xff] %v3539_v39  ;;  %4628 = vst [vmem:[#allocation84_spill] sm:$0xff] %v3541_v29  ;;  %vm1426_vm0 = vcmp.eq.s32.totalorder %v4592_v63, %v4630_v55  ;;  %1530 = vmax.xlane.f32.xlu1 %v3550_v10 }
 0x346   : > { %v3555_v61 = vtrunc.f32 %v1285_v48  ;;  %v3557_v17 = vsub.f32 %v1247_v33, %v1285_v48  ;;  %v3559_v13 = vtrunc.f32 %v1268_v58  ;;  %v3562_v35 = vsub.f32 %v1213_v4, %v1268_v58 }
 0x347   : > { %v3565_v29 = vsel %vm1426_vm0, -inf, %v3035_v6  ;;  %v1219_v62 = vpop.xlane.xlu1 %1218  ;;  %v1245_v56 = vpop.xlane.xlu0 %1244  ;;  %vm1429_vm1 = vcmp.eq.s32.totalorder %v4592_v63, %v4635_v41  ;;  %v4636_v6 = vcvt.f32.s32 %v3539_v39 }
 0x348   : > { %4631 = vst [vmem:[#allocation85_spill] sm:$0xff] %v3555_v61  ;;  %4632 = vst [vmem:[#allocation86_spill] sm:$0xff] %v3557_v17  ;;  %1496 = vmax.xlane.f32.xlu0 %v3565_v29  ;;  %v1271_v33 = vfloor.f32 %v1219_v62  ;;  %v1284_v32 = vfloor.f32 %v1245_v56  ;;  %v3574_v4 = vsel %vm1429_vm1, -inf, %v3048_v46  ;;  %v4641_v17 = vcvt.f32.s32 %v3555_v61 }
 0x349   : > { %4633 = vst [vmem:[#allocation87_spill] sm:$0xff] %v3559_v13  ;;  %4634 = vst [vmem:[#allocation88_spill] sm:$0xff] %v3562_v35  ;;  %vm1442_vm2 = vcmp.eq.s32.totalorder %v4592_v63, %v4636_v6  ;;  %1502 = vmax.xlane.f32.xlu1 %v3574_v4 }
 0x34a   : > { %v3579_v58 = vtrunc.f32 %v1271_v33  ;;  %v3581_v5 = vsub.f32 %v1219_v62, %v1271_v33  ;;  %v3585_v41 = vsel %vm1442_vm2, -inf, %v3051_v2  ;;  %v3587_v55 = vtrunc.f32 %v1284_v32 }
 0x34b   : > { %v3589_v48 = vsub.f32 %v1245_v56, %v1284_v32  ;;  %v1251_v35 = vpop.xlane.xlu1 %1250  ;;  %v1217_v46 = vpop.xlane.xlu0 %1216  ;;  %vm1445_vm3 = vcmp.eq.s32.totalorder %v4592_v63, %v4641_v17  ;;  %v4642_v32 = vcvt.f32.s32 %v3559_v13 }
 0x34c   : > { %4637 = vst [vmem:[#allocation89_spill] sm:$0xff] %v3579_v58  ;;  %4638 = vst [vmem:[#allocation90_spill] sm:$0xff] %v3581_v5  ;;  %1528 = vmax.xlane.f32.xlu0 %v3585_v41  ;;  %v1287_v62 = vfloor.f32 %v1251_v35  ;;  %v1270_v33 = vfloor.f32 %v1217_v46  ;;  %v3598_v2 = vsel %vm1445_vm3, -inf, %v3064_v14  ;;  %v4647_v5 = vcvt.f32.s32 %v3579_v58 }
 0x34d   : > { %4639 = vst [vmem:[#allocation91_spill] sm:$0xff] %v3587_v55  ;;  %4640 = vst [vmem:[#allocation92_spill] sm:$0xff] %v3589_v48  ;;  %vm1428_vm4 = vcmp.eq.s32.totalorder %v4592_v63, %v4642_v32  ;;  %1534 = vmax.xlane.f32.xlu1 %v3598_v2 }
 0x34e   : > { %v3603_v56 = vtrunc.f32 %v1287_v62  ;;  %v3605_v61 = vsub.f32 %v1251_v35, %v1287_v62  ;;  %v3607_v17 = vtrunc.f32 %v1270_v33  ;;  %v3610_v6 = vsub.f32 %v1217_v46, %v1270_v33 }
 0x34f   : > { %v3613_v48 = vsel %vm1428_vm4, -inf, %v3067_v27  ;;  %v1223_v39 = vpop.xlane.xlu1 %1222  ;;  %v1249_v14 = vpop.xlane.xlu0 %1248  ;;  %vm1431_vm5 = vcmp.eq.s32.totalorder %v4592_v63, %v4647_v5  ;;  %v4648_v27 = vcvt.f32.s32 %v3587_v55 }
 0x350   : > { %4643 = vst [vmem:[#allocation93_spill] sm:$0xff] %v3603_v56  ;;  %4644 = vst [vmem:[#allocation94_spill] sm:$0xff] %v3605_v61  ;;  %1500 = vmax.xlane.f32.xlu0 %v3613_v48  ;;  %v1273_v35 = vfloor.f32 %v1223_v39  ;;  %v1286_v13 = vfloor.f32 %v1249_v14  ;;  %v3622_v46 = vsel %vm1431_vm5, -inf, %v3080_v38  ;;  %v4653_v61 = vcvt.f32.s32 %v3603_v56 }
 0x351   : > { %4645 = vst [vmem:[#allocation95_spill] sm:$0xff] %v3607_v17  ;;  %4646 = vst [vmem:[#allocation96_spill] sm:$0xff] %v3610_v6  ;;  %vm1444_vm6 = vcmp.eq.s32.totalorder %v4592_v63, %v4648_v27  ;;  %1506 = vmax.xlane.f32.xlu1 %v3622_v46 }
 0x352   : > { %v3627_v33 = vtrunc.f32 %v1273_v35  ;;  %v3629_v58 = vsub.f32 %v1223_v39, %v1273_v35  ;;  %v3633_v5 = vsel %vm1444_vm6, -inf, %v4563_v24  ;;  %v3635_v32 = vtrunc.f32 %v1286_v13 }
 0x353   : > { %v3637_v62 = vsub.f32 %v1249_v14, %v1286_v13  ;;  %v1255_v6 = vpop.xlane.xlu1 %1254  ;;  %v1221_v38 = vpop.xlane.xlu0 %1220  ;;  %vm1447_vm7 = vcmp.eq.s32.totalorder %v4592_v63, %v4653_v61  ;;  %v4654_v13 = vcvt.f32.s32 %v3607_v17 }
 0x354   : > { %4649 = vst [vmem:[#allocation97_spill] sm:$0xff] %v3627_v33  ;;  %4650 = vst [vmem:[#allocation98_spill] sm:$0xff] %v3629_v58  ;;  %1532 = vmax.xlane.f32.xlu0 %v3633_v5  ;;  %v1289_v39 = vfloor.f32 %v1255_v6  ;;  %v1272_v35 = vfloor.f32 %v1221_v38  ;;  %v3646_v24 = vsel %vm1447_vm7, -inf, %v4566_v3  ;;  %v4658_v58 = vcvt.f32.s32 %v3627_v33 }
 0x355   : > { %4651 = vst [vmem:[#allocation99_spill] sm:$0xff] %v3635_v32  ;;  %4652 = vst [vmem:[#allocation100_spill] sm:$0xff] %v3637_v62  ;;  %vm1430_vm8 = vcmp.eq.s32.totalorder %v4592_v63, %v4654_v13  ;;  %1538 = vmax.xlane.f32.xlu1 %v3646_v24 }
 0x356   : > { %v3651_v14 = vtrunc.f32 %v1289_v39  ;;  %v3653_v56 = vsub.f32 %v1255_v6, %v1289_v39  ;;  %v3655_v61 = vtrunc.f32 %v1272_v35  ;;  %v3658_v27 = vsub.f32 %v1221_v38, %v1272_v35 }
 0x357   : > { %v3661_v62 = vsel %vm1430_vm8, -inf, %v4567_v7  ;;  %v1227_v55 = vpop.xlane.xlu1 %1226  ;;  %v1253_v3 = vpop.xlane.xlu0 %1252  ;;  %vm1433_vm9 = vcmp.eq.s32.totalorder %v4592_v63, %v4658_v58  ;;  %v4659_v7 = vcvt.f32.s32 %v3635_v32 }
 0x358   : > { %4655 = vst [vmem:[#allocation101_spill] sm:$0xff] %v3651_v14  ;;  %4656 = vst [vmem:[#allocation102_spill] sm:$0xff] %v3655_v61  ;;  %1504 = vmax.xlane.f32.xlu0 %v3661_v62  ;;  %v1275_v6 = vfloor.f32 %v1227_v55  ;;  %v1288_v17 = vfloor.f32 %v1253_v3  ;;  %v3670_v38 = vsel %vm1433_vm9, -inf, %v4570_v21  ;;  %v4663_v32 = vcvt.f32.s32 %v3651_v14 }
 0x359   : > { %4657 = vst [vmem:[#allocation103_spill] sm:$0xff] %v3658_v27  ;;  %vm1446_vm10 = vcmp.eq.s32.totalorder %v4592_v63, %v4659_v7  ;;  %1510 = vmax.xlane.f32.xlu1 %v3670_v38 }
 0x35a   : > { %v3675_v35 = vtrunc.f32 %v1275_v6  ;;  %v3677_v33 = vsub.f32 %v1227_v55, %v1275_v6  ;;  %v3681_v58 = vsel %vm1446_vm10, -inf, %v4571_v12  ;;  %v3683_v13 = vtrunc.f32 %v1288_v17 }
 0x35b   : > { %v3685_v39 = vsub.f32 %v1253_v3, %v1288_v17  ;;  %v3687_v27 = vpop.xlane.xlu1 %1258  ;;  %v1225_v21 = vpop.xlane.xlu0 %1224  ;;  %vm1449_vm11 = vcmp.eq.s32.totalorder %v4592_v63, %v4663_v32  ;;  %v4664_v17 = vcvt.f32.s32 %v3655_v61 }
 0x35c   : > { %4660 = vst [vmem:[#allocation104_spill] sm:$0xff] %v3675_v35  ;;  %4661 = vst [vmem:[#allocation105_spill] sm:$0xff] %v3677_v33  ;;  %1536 = vmax.xlane.f32.xlu0 %v3681_v58  ;;  %v4494_v55 = vfloor.f32 %v3687_v27  ;;  %v1274_v6 = vfloor.f32 %v1225_v21  ;;  %v3697_v33 = vsel %vm1449_vm11, -inf, %v4574_v25  ;;  %v4668_v25 = vcvt.f32.s32 %v3675_v35 }
 0x35d   : > { %4662 = vst [vmem:[#allocation106_spill] sm:$0xff] %v3683_v13  ;;  %vm1432_vm12 = vcmp.eq.s32.totalorder %v4592_v63, %v4664_v17  ;;  %1542 = vmax.xlane.f32.xlu1 %v3697_v33 }
 0x35e   : > { %v3704_v3 = vtrunc.f32 %v4494_v55  ;;  %v3706_v32 = vtrunc.f32 %v1274_v6  ;;  %v3709_v7 = vsub.f32 %v1225_v21, %v1274_v6  ;;  %v3712_v14 = vsel %vm1432_vm12, -inf, %v4575_v20 }
 0x35f   : > { %v3714_v12 = vpop.xlane.xlu0 %1256  ;;  %vm1435_vm13 = vcmp.eq.s32.totalorder %v4592_v63, %v4668_v25  ;;  %v4669_v20 = vcvt.f32.s32 %v3683_v13  ;;  %v4748_v13 = vld [vmem:[#allocation92_spill] sm:$0xff] }
 0x360   : > { %4665 = vst [vmem:[#allocation107_spill] sm:$0xff] %v3704_v3  ;;  %4666 = vst [vmem:[#allocation108_spill] sm:$0xff] %v3706_v32  ;;  %v4498_v17 = vcvt.f32.s32 %v3704_v3  ;;  %v4497_v55 = vcvt.f32.s32 %v3706_v32  ;;  %1508 = vmax.xlane.f32.xlu0 %v3712_v14  ;;  %v4496_v61 = vfloor.f32 %v3714_v12  ;;  %v3724_v21 = vsel %vm1435_vm13, -inf, %v4578_v40  ;;  %v4743_v3 = vld [vmem:[#allocation88_spill] sm:$0xff] }
 0x361   : > { %4667 = vst [vmem:[#allocation109_spill] sm:$0xff] %v3714_v12  ;;  %vm1448_vm14 = vcmp.eq.s32.totalorder %v4592_v63, %v4669_v20  ;;  %1514 = vmax.xlane.f32.xlu1 %v3724_v21  ;;  %v1380_v12 = vsub.f32 1.0, %v4748_v13 }
 0x362   : > { %v3731_v6 = vtrunc.f32 %v4496_v61  ;;  %v3735_v25 = vsel %vm1448_vm14, -inf, %v4579_v11  ;;  %vm1451_vm15 = vcmp.eq.s32.totalorder %v4592_v63, %v4498_v17  ;;  %vm1434_vm0 = vcmp.eq.s32.totalorder %v4592_v63, %v4497_v55 }
 0x363   : > { %v3746_v20 = vsel %vm1451_vm15, -inf, %v4582_v18  ;;  %v3749_v61 = vsel %vm1434_vm0, -inf, %v4583_v22 }
 0x364   : > { %4670 = vst [vmem:[#allocation110_spill] sm:$0xff] %v3731_v6  ;;  %v4499_v40 = vcvt.f32.s32 %v3731_v6  ;;  %1540 = vmax.xlane.f32.xlu0 %v3735_v25 }
 0x365   : > { %1546 = vmax.xlane.f32.xlu1 %v3746_v20 }
 0x366   : > { %vm1450_vm1 = vcmp.eq.s32.totalorder %v4592_v63, %v4499_v40  ;;  %v4671_v40 = vld [vmem:[#allocation47_spill] sm:$0xff] }
 0x367   : > { %v3757_v11 = vsel %vm1450_vm1, -inf, %v4585_v36 }
 0x368   : > { %1512 = vmax.xlane.f32.xlu0 %v3749_v61 }
 0x36c   : > { %1544 = vmax.xlane.f32.xlu0 %v3757_v11 }
 0x3b0   : > { %v1487_v55 = vpop.xlane.xlu1 %1486 }
 0x3b1   : > { %vm1549_vm2 = vcmp.eq.f32.partialorder %v3388_v57, %v1487_v55 }
 0x3b2   : > { %v1581_v18 = vsel %vm1549_vm2, %v3184_v26, 1e+09 }
 0x3b3   : > { %1614 = vmin.xlane.f32.xlu1 %v1581_v18  ;;  %v4676_v18 = vld [vmem:[#allocation51_spill] sm:$0xff] }
 0x3b4   : > { %v1485_v17 = vpop.xlane.xlu0 %1484 }
 0x3b5   : > { %v1519_v22 = vpop.xlane.xlu1 %1518  ;;  %vm1548_vm4 = vcmp.eq.f32.partialorder %v3411_v15, %v1485_v17 }
 0x3b6   : > { %vm1565_vm3 = vcmp.eq.f32.partialorder %v3408_v16, %v1519_v22  ;;  %v1580_v6 = vsel %vm1548_vm4, %v4671_v40, 1e+09 }
 0x3b7   : > { %v1597_v63 = vsel %vm1565_vm3, %v3192_v47, 1e+09  ;;  %1612 = vmin.xlane.f32.xlu0 %v1580_v6 }
 0x3b8   : > { %1646 = vmin.xlane.f32.xlu1 %v1597_v63  ;;  %v1517_v36 = vpop.xlane.xlu0 %1516 }
 0x3b9   : > { %vm1564_vm5 = vcmp.eq.f32.partialorder %v3431_v31, %v1517_v36  ;;  %v1491_v32 = vpop.xlane.xlu1 %1490 }
 0x3ba   : > { %v1596_v57 = vsel %vm1564_vm5, %v3204_v30, 1e+09  ;;  %vm1551_vm6 = vcmp.eq.f32.partialorder %v3437_v34, %v1491_v32 }
 0x3bb   : > { %1644 = vmin.xlane.f32.xlu0 %v1596_v57  ;;  %v1583_v26 = vsel %vm1551_vm6, %v3201_v8, 1e+09  ;;  %v4678_v57 = vld [vmem:[#allocation24_spill] sm:$0xff] }
 0x3bc   : > { %1618 = vmin.xlane.f32.xlu1 %v1583_v26 }
 0x3bd   : > { %v1523_v16 = vpop.xlane.xlu1 %1522 }
 0x3be   : > { %vm1567_vm7 = vcmp.eq.f32.partialorder %v3452_v50, %v1523_v16 }
 0x3bf   : > { %v1599_v47 = vsel %vm1567_vm7, %v3214_v0, 1e+09 }
 0x3c0   : > { %1650 = vmin.xlane.f32.xlu1 %v1599_v47 }
 0x3c1   : > { %v1489_v15 = vpop.xlane.xlu0 %1488 }
 0x3c2   : > { %vm1550_vm8 = vcmp.eq.f32.partialorder %v3469_v9, %v1489_v15  ;;  %v1495_v55 = vpop.xlane.xlu1 %1494  ;;  %v4680_v15 = vld [vmem:[#allocation28_spill] sm:$0xff] }
 0x3c3   : > { %v1582_v31 = vsel %vm1550_vm8, %v3217_v43, 1e+09  ;;  %vm1553_vm9 = vcmp.eq.f32.partialorder %v3478_v42, %v1495_v55 }
 0x3c4   : > { %1616 = vmin.xlane.f32.xlu0 %v1582_v31  ;;  %v1585_v30 = vsel %vm1553_vm9, %v3228_v23, 1e+09 }
 0x3c5   : > { %v1521_v34 = vpop.xlane.xlu0 %1520  ;;  %1622 = vmin.xlane.f32.xlu1 %v1585_v30 }
 0x3c6   : > { %vm1566_vm10 = vcmp.eq.f32.partialorder %v3489_v59, %v1521_v34  ;;  %v1527_v50 = vpop.xlane.xlu1 %1526  ;;  %v4682_v34 = vld [vmem:[#allocation31_spill] sm:$0xff] }
 0x3c7   : > { %v1598_v8 = vsel %vm1566_vm10, %v3225_v49, 1e+09  ;;  %vm1569_vm11 = vcmp.eq.f32.partialorder %v3502_v37, %v1527_v50 }
 0x3c8   : > { %1648 = vmin.xlane.f32.xlu0 %v1598_v8  ;;  %v1601_v0 = vsel %vm1569_vm11, %v3241_v19, 1e+09 }
 0x3c9   : > { %v1493_v9 = vpop.xlane.xlu0 %1492  ;;  %1654 = vmin.xlane.f32.xlu1 %v1601_v0 }
 0x3ca   : > { %vm1552_vm12 = vcmp.eq.f32.partialorder %v3517_v54, %v1493_v9  ;;  %v1499_v42 = vpop.xlane.xlu1 %1498  ;;  %v4684_v9 = vld [vmem:[#allocation35_spill] sm:$0xff] }
 0x3cb   : > { %v1584_v43 = vsel %vm1552_vm12, %v3237_v52, 1e+09  ;;  %vm1555_vm13 = vcmp.eq.f32.partialorder %v3526_v45, %v1499_v42 }
 0x3cc   : > { %1620 = vmin.xlane.f32.xlu0 %v1584_v43  ;;  %v1587_v23 = vsel %vm1555_vm13, %v3250_v28, 1e+09 }
 0x3cd   : > { %v1525_v59 = vpop.xlane.xlu0 %1524  ;;  %1626 = vmin.xlane.f32.xlu1 %v1587_v23 }
 0x3ce   : > { %vm1568_vm14 = vcmp.eq.f32.partialorder %v3537_v44, %v1525_v59  ;;  %v1531_v37 = vpop.xlane.xlu1 %1530  ;;  %v4686_v59 = vld [vmem:[#allocation40_spill] sm:$0xff] }
 0x3cf   : > { %v1600_v49 = vsel %vm1568_vm14, %v3253_v60, 1e+09  ;;  %vm1571_vm15 = vcmp.eq.f32.partialorder %v3550_v10, %v1531_v37  ;;  %v4672_v60 = vld [vmem:[#allocation48_spill] sm:$0xff] }
 0x3d0   : > { %1652 = vmin.xlane.f32.xlu0 %v1600_v49  ;;  %v1603_v19 = vsel %vm1571_vm15, %v3264_v53, 1e+09  ;;  %v4673_v53 = vld [vmem:[#allocation49_spill] sm:$0xff] }
 0x3d1   : > { %v1497_v54 = vpop.xlane.xlu0 %1496  ;;  %1658 = vmin.xlane.f32.xlu1 %v1603_v19  ;;  %v4688_v19 = vld [vmem:[#allocation3_spill] sm:$0xff] }
 0x3d2   : > { %vm1554_vm0 = vcmp.eq.f32.partialorder %v3565_v29, %v1497_v54  ;;  %v1503_v45 = vpop.xlane.xlu1 %1502  ;;  %2422 = vrcp.f32 %v4688_v19  ;;  %v4689_v54 = vld [vmem:[#allocation4_spill] sm:$0xff] }
 0x3d3   : > { %v1586_v52 = vsel %vm1554_vm0, %v3261_v1, 1e+09  ;;  %vm1557_vm1 = vcmp.eq.f32.partialorder %v3574_v4, %v1503_v45  ;;  %v4674_v1 = vld [vmem:[#allocation50_spill] sm:$0xff]  ;;  %2424 = vrcp.f32 %v4689_v54  ;;  %v4692_v45 = vld [vmem:[#allocation7_spill] sm:$0xff] }
 0x3d4   : > { %1624 = vmin.xlane.f32.xlu0 %v1586_v52  ;;  %v1589_v28 = vsel %vm1557_vm1, %v3277_v51, 1e+09  ;;  %v4675_v51 = vld [vmem:[#allocation52_spill] sm:$0xff]  ;;  %v4691_v52 = vld [vmem:[#allocation6_spill] sm:$0xff] }
 0x3d5   : > { %v1529_v44 = vpop.xlane.xlu0 %1528  ;;  %1630 = vmin.xlane.f32.xlu1 %v1589_v28  ;;  %v4694_v28 = vld [vmem:[#allocation9_spill] sm:$0xff] }
 0x3d6   : > { %vm1570_vm2 = vcmp.eq.f32.partialorder %v3585_v41, %v1529_v44  ;;  %v1535_v32 = vpop.xlane.xlu1 %1534  ;;  %v4695_v44 = vld [vmem:[#allocation10_spill] sm:$0xff] }
 0x3d7   : > { %v1602_v10 = vsel %vm1570_vm2, %v4672_v60, 1e+09  ;;  %vm1573_vm3 = vcmp.eq.f32.partialorder %v3598_v2, %v1535_v32  ;;  %v4697_v60 = vld [vmem:[#allocation12_spill] sm:$0xff]  ;;  %v4699_v32 = vld [vmem:[#allocation14_spill] sm:$0xff]  ;;  %vm1836_vm2 = vcmask 7168  }
 0x3d8   : > { %1656 = vmin.xlane.f32.xlu0 %v1602_v10  ;;  %v1605_v29 = vsel %vm1573_vm3, %v4673_v53, 1e+09  ;;  %v4698_v10 = vld [vmem:[#allocation13_spill] sm:$0xff]  ;;  %v4700_v53 = vld [vmem:[#allocation15_spill] sm:$0xff]  ;;  %vm1869_vm3 = vcmask 15360  }
 0x3d9   : > { %v1501_v17 = vpop.xlane.xlu0 %1500  ;;  %1662 = vmin.xlane.f32.xlu1 %v1605_v29 }
 0x3da   : > { %vm1556_vm4 = vcmp.eq.f32.partialorder %v3613_v48, %v1501_v17  ;;  %v1507_v6 = vpop.xlane.xlu1 %1506  ;;  %v4677_v48 = vld [vmem:[#allocation53_spill] sm:$0xff]  ;;  %v4701_v17 = vld [vmem:[#allocation16_spill] sm:$0xff] }
 0x3db   : > { %v1588_v4 = vsel %vm1556_vm4, %v4674_v1, 1e+09  ;;  %vm1559_vm5 = vcmp.eq.f32.partialorder %v3622_v46, %v1507_v6 }
 0x3dc   : > { %1628 = vmin.xlane.f32.xlu0 %v1588_v4  ;;  %v1591_v41 = vsel %vm1559_vm5, %v4675_v51, 1e+09  ;;  %v4702_v4 = vld [vmem:[#allocation17_spill] sm:$0xff]  ;;  %v4703_v51 = vld [vmem:[#allocation18_spill] sm:$0xff] }
 0x3dd   : > { %v1533_v40 = vpop.xlane.xlu0 %1532  ;;  %1634 = vmin.xlane.f32.xlu1 %v1591_v41 }
 0x3de   : > { %vm1572_vm6 = vcmp.eq.f32.partialorder %v3633_v5, %v1533_v40  ;;  %v1539_v22 = vpop.xlane.xlu1 %1538  ;;  %v4679_v5 = vld [vmem:[#allocation27_spill] sm:$0xff] }
 0x3df   : > { %v1604_v2 = vsel %vm1572_vm6, %v4676_v18, 1e+09  ;;  %vm1575_vm7 = vcmp.eq.f32.partialorder %v3646_v24, %v1539_v22  ;;  %v2423_v29 = vpop.eup %2422  ;;  %v4704_v40 = vld [vmem:[#allocation19_spill] sm:$0xff] }
 0x3e0   : > { %1660 = vmin.xlane.f32.xlu0 %v1604_v2  ;;  %v1607_v63 = vsel %vm1575_vm7, %v4677_v48, 1e+09  ;;  %v2425_v1 = vpop.eup %2424  ;;  %v4705_v2 = vld [vmem:[#allocation20_spill] sm:$0xff]  ;;  %v4706_v48 = vld [vmem:[#allocation21_spill] sm:$0xff] }
 0x3e1   : > { %v1505_v36 = vpop.xlane.xlu0 %1504  ;;  %1666 = vmin.xlane.f32.xlu1 %v1607_v63  ;;  %v3858_v19 = vmul.f32 2.5, %v2425_v1 }
 0x3e2   : > { %vm1558_vm8 = vcmp.eq.f32.partialorder %v3661_v62, %v1505_v36  ;;  %v1511_v26 = vpop.xlane.xlu1 %1510  ;;  %v4681_v62 = vld [vmem:[#allocation32_spill] sm:$0xff]  ;;  %v4707_v36 = vld [vmem:[#allocation22_spill] sm:$0xff] }
 0x3e3   : > { %v1590_v46 = vsel %vm1558_vm8, %v4678_v57, 1e+09  ;;  %vm1561_vm9 = vcmp.eq.f32.partialorder %v3670_v38, %v1511_v26 }
 0x3e4   : > { %1632 = vmin.xlane.f32.xlu0 %v1590_v46  ;;  %v1593_v16 = vsel %vm1561_vm9, %v4679_v5, 1e+09  ;;  %v4708_v46 = vld [vmem:[#allocation23_spill] sm:$0xff]  ;;  %v4709_v5 = vld [vmem:[#allocation25_spill] sm:$0xff] }
 0x3e5   : > { %v1537_v47 = vpop.xlane.xlu0 %1536  ;;  %1638 = vmin.xlane.f32.xlu1 %v1593_v16 }
 0x3e6   : > { %vm1574_vm10 = vcmp.eq.f32.partialorder %v3681_v58, %v1537_v47  ;;  %v1543_v31 = vpop.xlane.xlu1 %1542  ;;  %v4683_v58 = vld [vmem:[#allocation36_spill] sm:$0xff]  ;;  %v4710_v47 = vld [vmem:[#allocation26_spill] sm:$0xff] }
 0x3e7   : > { %v1606_v24 = vsel %vm1574_vm10, %v4680_v15, 1e+09  ;;  %vm1577_vm11 = vcmp.eq.f32.partialorder %v3697_v33, %v1543_v31 }
 0x3e8   : > { %1664 = vmin.xlane.f32.xlu0 %v1606_v24  ;;  %v1609_v55 = vsel %vm1577_vm11, %v4681_v62, 1e+09  ;;  %v4711_v24 = vld [vmem:[#allocation29_spill] sm:$0xff]  ;;  %v4712_v62 = vld [vmem:[#allocation30_spill] sm:$0xff] }
 0x3e9   : > { %v1509_v30 = vpop.xlane.xlu0 %1508  ;;  %1670 = vmin.xlane.f32.xlu1 %v1609_v55 }
 0x3ea   : > { %vm1560_vm12 = vcmp.eq.f32.partialorder %v3712_v14, %v1509_v30  ;;  %v1515_v8 = vpop.xlane.xlu1 %1514  ;;  %v4685_v14 = vld [vmem:[#allocation39_spill] sm:$0xff]  ;;  %v4713_v30 = vld [vmem:[#allocation33_spill] sm:$0xff] }
 0x3eb   : > { %v1592_v38 = vsel %vm1560_vm12, %v4682_v34, 1e+09  ;;  %vm1563_vm13 = vcmp.eq.f32.partialorder %v3724_v21, %v1515_v8 }
 0x3ec   : > { %1636 = vmin.xlane.f32.xlu0 %v1592_v38  ;;  %v1595_v50 = vsel %vm1563_vm13, %v4683_v58, 1e+09  ;;  %v4714_v38 = vld [vmem:[#allocation34_spill] sm:$0xff]  ;;  %v4715_v58 = vld [vmem:[#allocation37_spill] sm:$0xff] }
 0x3ed   : > { %v1541_v0 = vpop.xlane.xlu0 %1540  ;;  %1642 = vmin.xlane.f32.xlu1 %v1595_v50 }
 0x3ee   : > { %vm1576_vm14 = vcmp.eq.f32.partialorder %v3735_v25, %v1541_v0  ;;  %v1547_v43 = vpop.xlane.xlu1 %1546  ;;  %v4687_v25 = vld [vmem:[#allocation43_spill] sm:$0xff]  ;;  %v4716_v0 = vld [vmem:[#allocation38_spill] sm:$0xff] }
 0x3ef   : > { %v1608_v33 = vsel %vm1576_vm14, %v4684_v9, 1e+09  ;;  %vm1579_vm15 = vcmp.eq.f32.partialorder %v3746_v20, %v1547_v43  ;;  %v4690_v20 = vld [vmem:[#allocation5_spill] sm:$0xff] }
 0x3f0   : > { %1668 = vmin.xlane.f32.xlu0 %v1608_v33  ;;  %v1611_v42 = vsel %vm1579_vm15, %v4685_v14, 1e+09  ;;  %2426 = vrcp.f32 %v4690_v20  ;;  %v4717_v33 = vld [vmem:[#allocation41_spill] sm:$0xff] }
 0x3f1   : > { %v1513_v23 = vpop.xlane.xlu0 %1512  ;;  %1674 = vmin.xlane.f32.xlu1 %v1611_v42  ;;  %2428 = vrcp.f32 %v4691_v52 }
 0x3f2   : > { %vm1562_vm0 = vcmp.eq.f32.partialorder %v3749_v61, %v1513_v23  ;;  %2430 = vrcp.f32 %v4692_v45  ;;  %v4693_v61 = vld [vmem:[#allocation8_spill] sm:$0xff] }
 0x3f3   : > { %v1594_v21 = vsel %vm1562_vm0, %v4686_v59, 1e+09  ;;  %2432 = vrcp.f32 %v4693_v61 }
 0x3f4   : > { %1640 = vmin.xlane.f32.xlu0 %v1594_v21  ;;  %2434 = vrcp.f32 %v4694_v28 }
 0x3f5   : > { %v1545_v49 = vpop.xlane.xlu0 %1544  ;;  %2436 = vrcp.f32 %v4695_v44 }
 0x3f6   : > { %vm1578_vm1 = vcmp.eq.f32.partialorder %v3757_v11, %v1545_v49  ;;  %v4696_v11 = vld [vmem:[#allocation11_spill] sm:$0xff] }
 0x3f7   : > { %v1610_v37 = vsel %vm1578_vm1, %v4687_v25, 1e+09  ;;  %2438 = vrcp.f32 %v4696_v11  ;;  %v3854_v25 = vmul.f32 2.5, %v2423_v29 }
 0x3f8   : > { %1672 = vmin.xlane.f32.xlu0 %v1610_v37  ;;  %2440 = vrcp.f32 %v4697_v60 }
 0x3f9   : > { %2442 = vrcp.f32 %v4698_v10 }
 0x3fa   : > { %2444 = vrcp.f32 %v4699_v32 }
 0x3fb   : > { %2446 = vrcp.f32 %v4700_v53 }
 0x3fc   : > { %2448 = vrcp.f32 %v4701_v17 }
 0x3fd   : > { %2450 = vrcp.f32 %v4702_v4  ;;  %v2427_v6 = vpop.eup %2426 }
 0x3fe   : > { %2452 = vrcp.f32 %v4703_v51  ;;  %v2429_v41 = vpop.eup %2428  ;;  %v3856_v37 = vmul.f32 2.5, %v2427_v6 }
 0x3ff   : > { %2454 = vrcp.f32 %v4704_v40  ;;  %v2431_v18 = vpop.eup %2430  ;;  %v3862_v52 = vmul.f32 2.5, %v2429_v41 }
 0x400   : > { %2456 = vrcp.f32 %v4705_v2  ;;  %v2433_v22 = vpop.eup %2432  ;;  %v3860_v20 = vmul.f32 2.5, %v2431_v18  ;;  %v4720_v2 = vld [vmem:[#allocation46_spill] sm:$0xff] }
 0x401   : > { %2458 = vrcp.f32 %v4706_v48  ;;  %v2435_v63 = vpop.eup %2434  ;;  %v3864_v45 = vmul.f32 2.5, %v2433_v22  ;;  %v1357_v22 = vsub.f32 1.0, %v4720_v2  ;;  %v4735_v2 = vld [vmem:[#allocation72_spill] sm:$0xff] }
 0x402   : > { %2460 = vrcp.f32 %v4707_v36  ;;  %v2437_v57 = vpop.eup %2436  ;;  %v3866_v61 = vmul.f32 2.5, %v2435_v63 }
 0x403   : > { %2462 = vrcp.f32 %v4708_v46  ;;  %v3868_v44 = vmul.f32 2.5, %v2437_v57  ;;  %v4723_v46 = vld [vmem:[#allocation42_spill] sm:$0xff] }
 0x404   : > { %v2439_v26 = vpop.eup %2438  ;;  %2464 = vrcp.f32 %v4709_v5 }
 0x405   : > { %v2441_v16 = vpop.eup %2440  ;;  %2466 = vrcp.f32 %v4710_v47  ;;  %v3870_v11 = vmul.f32 2.5, %v2439_v26  ;;  %v4724_v26 = vld [vmem:[#allocation57_spill] sm:$0xff] }
 0x406   : > { %v2443_v15 = vpop.eup %2442  ;;  %2468 = vrcp.f32 %v4711_v24  ;;  %v3872_v60 = vmul.f32 2.5, %v2441_v16  ;;  %v1373_v5 = vsub.f32 1.0, %v4724_v26  ;;  %v4725_v16 = vld [vmem:[#allocation55_spill] sm:$0xff]  ;;  %v4726_v24 = vld [vmem:[#allocation45_spill] sm:$0xff] }
 0x407   : > { %v2445_v31 = vpop.eup %2444  ;;  %2470 = vrcp.f32 %v4712_v62  ;;  %v3874_v10 = vmul.f32 2.5, %v2443_v15  ;;  %v1356_v47 = vsub.f32 1.0, %v4725_v16 }
 0x408   : > { %v2447_v55 = vpop.eup %2446  ;;  %2472 = vrcp.f32 %v4713_v30  ;;  %v3876_v53 = vmul.f32 2.5, %v2445_v31  ;;  %v4727_v30 = vld [vmem:[#allocation58_spill] sm:$0xff] }
 0x409   : > { %v2449_v34 = vpop.eup %2448  ;;  %2474 = vrcp.f32 %v4714_v38  ;;  %v3878_v29 = vmul.f32 2.5, %v2447_v55 }
 0x40a   : > { %v2451_v8 = vpop.eup %2450  ;;  %2476 = vrcp.f32 %v4715_v58  ;;  %v3880_v17 = vmul.f32 2.5, %v2449_v34  ;;  %v1372_v34 = vsub.f32 1.0, %v4727_v30  ;;  %v4739_v30 = vld [vmem:[#allocation80_spill] sm:$0xff] }
 0x40b   : > { %v2453_v50 = vpop.eup %2452  ;;  %2478 = vrcp.f32 %v4716_v0  ;;  %v3882_v1 = vmul.f32 2.5, %v2451_v8  ;;  %v4728_v0 = vld [vmem:[#allocation60_spill] sm:$0xff] }
 0x40c   : > { %v2455_v9 = vpop.eup %2454  ;;  %2480 = vrcp.f32 %v4717_v33  ;;  %v3884_v6 = vmul.f32 2.5, %v2453_v50  ;;  %v3919_v50 = vmul.f32 %v1357_v22, %v3854_v25  ;;  %v4729_v33 = vld [vmem:[#allocation62_spill] sm:$0xff]  ;;  %v1360_v22 = vsub.f32 1.0, %v4735_v2 }
 0x40d   : > { %v2457_v43 = vpop.eup %2456  ;;  %v3886_v51 = vmul.f32 2.5, %v2455_v9  ;;  %2482 = vrcp.f32 %v4723_v46  ;;  %v1359_v9 = vsub.f32 1.0, %v4728_v0  ;;  %v4736_v46 = vld [vmem:[#allocation74_spill] sm:$0xff]  ;;  %v1362_v0 = vsub.f32 1.0, %v4739_v30 }
 0x40e   : > { %v2459_v14 = vpop.eup %2458  ;;  %4718 = vst [vmem:[#allocation47_spill] sm:$0xff] %v3884_v6  ;;  %v3888_v41 = vmul.f32 2.5, %v2457_v43  ;;  %2484 = vrcp.f32 %v4726_v24  ;;  %v1375_v43 = vsub.f32 1.0, %v4729_v33  ;;  %v1363_v26 = vsub.f32 1.0, %v4736_v46  ;;  %v4738_v24 = vld [vmem:[#allocation78_spill] sm:$0xff] }
 0x40f   : > { %v2461_v42 = vpop.eup %2460  ;;  %v3890_v40 = vmul.f32 2.5, %v2459_v14  ;;  %v3944_v33 = vmul.f32 %v1359_v9, %v3860_v20  ;;  %v1364_v30 = vsub.f32 1.0, %v4743_v3  ;;  %v3978_v3 = vmul.f32 %v1362_v0, %v3882_v1 }
 0x410   : > { %v2463_v23 = vpop.eup %2462  ;;  %v3893_v48 = vmul.f32 2.5, %v2461_v42  ;;  %v3926_v42 = vmul.f32 %v1373_v5, %v3856_v37  ;;  %v4737_v5 = vld [vmem:[#allocation76_spill] sm:$0xff] }
 0x411   : > { %v2465_v59 = vpop.eup %2464  ;;  %4719 = vst [vmem:[#allocation48_spill] sm:$0xff] %v3890_v40  ;;  %v3895_v63 = vmul.f32 2.5, %v2463_v23  ;;  %v3929_v23 = vmul.f32 %v1356_v47, %v3858_v19  ;;  %v1376_v16 = vsub.f32 1.0, %v4737_v5  ;;  %v1379_v47 = vsub.f32 1.0, %v4738_v24  ;;  %v4742_v5 = vld [vmem:[#allocation86_spill] sm:$0xff]  ;;  %4744 = vst [vmem:[#allocation51_spill] sm:$0xff] %v3978_v3 }
 0x412   : > { %v2467_v21 = vpop.eup %2466  ;;  %4721 = vst [vmem:[#allocation49_spill] sm:$0xff] %v3893_v48  ;;  %v3897_v36 = vmul.f32 2.5, %v2465_v59  ;;  %v4731_v59 = vld [vmem:[#allocation64_spill] sm:$0xff]  ;;  %v1381_v24 = vsub.f32 1.0, %v4742_v5 }
 0x413   : > { %v2469_v49 = vpop.eup %2468  ;;  %4722 = vst [vmem:[#allocation50_spill] sm:$0xff] %v3895_v63  ;;  %v3902_v15 = vmul.f32 2.5, %v2467_v21  ;;  %v1358_v21 = vsub.f32 1.0, %v4731_v59  ;;  %v3947_v59 = vmul.f32 %v1375_v43, %v3864_v45  ;;  %v3975_v5 = vmul.f32 %v1379_v47, %v3880_v17 }
 0x414   : > { %v2471_v54 = vpop.eup %2470  ;;  %v3905_v31 = vmul.f32 2.5, %v2469_v49  ;;  %v4732_v49 = vld [vmem:[#allocation66_spill] sm:$0xff]  ;;  %v3992_v47 = vmul.f32 %v1364_v30, %v3890_v40  ;;  %v4758_v40 = vld [vmem:[#allocation100_spill] sm:$0xff] }
 0x415   : > { %v2473_v28 = vpop.eup %2472  ;;  %v3907_v62 = vmul.f32 2.5, %v2471_v54  ;;  %v1361_v54 = vsub.f32 1.0, %v4732_v49  ;;  %v4740_v49 = vld [vmem:[#allocation82_spill] sm:$0xff]  ;;  %v3952_v46 = vmul.f32 %v1358_v21, %v3866_v61 }
 0x416   : > { %v2475_v32 = vpop.eup %2474  ;;  %v3909_v55 = vmul.f32 2.5, %v2473_v28  ;;  %v4733_v28 = vld [vmem:[#allocation68_spill] sm:$0xff]  ;;  %4750 = vst [vmem:[#allocation28_spill] sm:$0xff] %v3992_v47 }
 0x417   : > { %v2477_v4 = vpop.eup %2476  ;;  %v3912_v38 = vmul.f32 2.5, %v2475_v32  ;;  %v1374_v32 = vsub.f32 1.0, %v4733_v28  ;;  %v1365_v28 = vsub.f32 1.0, %v4740_v49  ;;  %v3966_v49 = vmul.f32 %v1360_v22, %v3874_v10 }
 0x418   : > { %v2479_v18 = vpop.eup %2478  ;;  %v3914_v8 = vmul.f32 2.5, %v2477_v4  ;;  %v4734_v4 = vld [vmem:[#allocation70_spill] sm:$0xff] }
 0x419   : > { %v2481_v57 = vpop.eup %2480  ;;  %v3916_v58 = vmul.f32 2.5, %v2479_v18  ;;  %v1377_v18 = vsub.f32 1.0, %v4734_v4  ;;  %v4741_v4 = vld [vmem:[#allocation84_spill] sm:$0xff]  ;;  %v3960_v9 = vmul.f32 %v1374_v32, %v3870_v11 }
 0x41a   : > { %v3923_v14 = vmul.f32 2.5, %v2481_v57  ;;  %v3938_v57 = vmul.f32 %v1372_v34, %v3862_v52  ;;  %v1378_v2 = vsub.f32 1.0, %v4741_v4  ;;  %v3955_v34 = vmul.f32 %v1361_v54, %v3868_v44  ;;  %v3994_v3 = vpop.eup %2482 }
 0x41b   : > { %v3963_v43 = vmul.f32 %v1377_v18, %v3872_v60  ;;  %v3969_v4 = vmul.f32 %v1363_v26, %v3876_v53  ;;  %v3972_v54 = vmul.f32 %v1376_v16, %v3878_v29  ;;  %v3981_v18 = vmul.f32 %v1365_v28, %v3884_v6  ;;  %v4747_v26 = vld [vmem:[#allocation90_spill] sm:$0xff]  ;;  %4751 = vst [vmem:[#allocation32_spill] sm:$0xff] %v3994_v3  ;;  %v4753_v6 = vld [vmem:[#allocation96_spill] sm:$0xff]  ;;  %v3998_v13 = vpop.eup %2484 }
 0x41c   : > { %4730 = vst [vmem:[#allocation52_spill] sm:$0xff] %v3923_v14  ;;  %v3984_v22 = vmul.f32 %v1378_v2, %v3886_v51  ;;  %v1367_v14 = vsub.f32 1.0, %v4747_v26  ;;  %v3989_v16 = vmul.f32 %v1381_v24, %v3888_v41  ;;  %v4752_v28 = vld [vmem:[#allocation94_spill] sm:$0xff]  ;;  %v1366_v2 = vsub.f32 1.0, %v4753_v6  ;;  %4754 = vst [vmem:[#allocation31_spill] sm:$0xff] %v3998_v13 }
 0x41d   : > { %4745 = vst [vmem:[#allocation53_spill] sm:$0xff] %v3981_v18  ;;  %v1383_v18 = vsub.f32 1.0, %v4752_v28  ;;  %v4010_v6 = vmul.f32 %v1380_v12, %v3895_v63  ;;  %v4757_v3 = vld [vmem:[#allocation98_spill] sm:$0xff]  ;;  %v1382_v13 = vsub.f32 1.0, %v4758_v40 }
 0x41e   : > { %4746 = vst [vmem:[#allocation24_spill] sm:$0xff] %v3984_v22  ;;  %4749 = vst [vmem:[#allocation27_spill] sm:$0xff] %v3989_v16  ;;  %v4007_v28 = vmul.f32 %v1367_v14, %v3893_v48  ;;  %v1369_v47 = vsub.f32 1.0, %v4757_v3  ;;  %v4028_v3 = vmul.f32 %v1366_v2, %v3902_v15 }
 0x41f   : > { %4756 = vst [vmem:[#allocation35_spill] sm:$0xff] %v4010_v6  ;;  %v4025_v12 = vmul.f32 %v1383_v18, %v3897_v36  ;;  %v4038_v18 = vmul.f32 %v1382_v13, %v3907_v62 }
 0x420   : > { %4755 = vst [vmem:[#allocation36_spill] sm:$0xff] %v4007_v28 }
 0x421   : > { %4761 = vst [vmem:[#allocation39_spill] sm:$0xff] %v4038_v18  ;;  %v4767_v18 = vld [vmem:[#allocation105_spill] sm:$0xff] }
 0x43c   : > { %v1615_v21 = vpop.xlane.xlu1 %1614 }
 0x43d   : > { %v1677_v32 = vfloor.f32 %v1615_v21 }
 0x43f   : > { %v2288_v0 = vtrunc.f32 %v1677_v32  ;;  %v1741_v35 = vsub.f32 %v1615_v21, %v1677_v32 }
 0x440   : > { %v1613_v22 = vpop.xlane.xlu0 %1612 }
 0x441   : > { %v1647_v26 = vpop.xlane.xlu1 %1646  ;;  %v2289_v24 = vcvt.f32.s32 %v2288_v0  ;;  %v1773_v30 = vsub.f32 1.0, %v1741_v35  ;;  %v1676_v32 = vfloor.f32 %v1613_v22  ;;  %v4759_v35 = vld [vmem:[#allocation44_spill] sm:$0xff] }
 0x442   : > { %v1693_v21 = vfloor.f32 %v1647_v26  ;;  %v4760_v16 = vcvt.f32.s32 %v4759_v35 }
 0x443   : > { %v1805_v0 = vmul.f32 %v1773_v30, %v3854_v25  ;;  %v2286_v40 = vtrunc.f32 %v1676_v32  ;;  %v1740_v6 = vsub.f32 %v1613_v22, %v1676_v32  ;;  %v4762_v32 = vld [vmem:[#allocation56_spill] sm:$0xff] }
 0x444   : > { %v1903_v14 = vsel %vm1836_vm2, %v4760_v16, %v2289_v24  ;;  %v2320_v28 = vtrunc.f32 %v1693_v21  ;;  %v1757_v48 = vsub.f32 %v1647_v26, %v1693_v21  ;;  %v1645_v63 = vpop.xlane.xlu0 %1644  ;;  %v4035_v26 = vmul.f32 %v1369_v47, %v3905_v31 }
 0x445   : > { %1935 = vst.msk [vmem:[%s4004_s17 + $0x8] sm:$0xff] %vm1869_vm3, %v1903_v14  ;;  %v1838_v25 = vsel %vm1836_vm2, %v3919_v50, %v1805_v0  ;;  %v1692_v16 = vfloor.f32 %v1645_v63  ;;  %v2287_v2 = vcvt.f32.s32 %v2286_v40  ;;  %v1772_v24 = vsub.f32 1.0, %v1740_v6  ;;  %v1619_v22 = vpop.xlane.xlu1 %1618  ;;  %v4764_v0 = vld [vmem:[#allocation54_spill] sm:$0xff] }
 0x446   : > { %v2321_v30 = vcvt.f32.s32 %v2320_v28  ;;  %v1789_v35 = vsub.f32 1.0, %v1757_v48  ;;  %1871 = vst.msk [vmem:[%s4018_s20 + $0x8] sm:$0xff] %vm1869_vm3, %v1838_v25  ;;  %v4763_v14 = vcvt.f32.s32 %v4762_v32  ;;  %v1679_v50 = vfloor.f32 %v1619_v22 }
 0x447   : > { %v2318_v28 = vtrunc.f32 %v1692_v16  ;;  %v1385_v47 = vsub.f32 1.0, %v3653_v56  ;;  %v1804_v13 = vmul.f32 %v1772_v24, %v3858_v19  ;;  %v4765_v40 = vcvt.f32.s32 %v4764_v0  ;;  %v4768_v24 = vld [vmem:[#allocation2_spill] sm:$0xff] }
 0x448   : > { %v1821_v21 = vmul.f32 %v1789_v35, %v3856_v37  ;;  %v1919_v48 = vsel %vm1836_vm2, %v4763_v14, %v2321_v30  ;;  %v1756_v25 = vsub.f32 %v1645_v63, %v1692_v16  ;;  %v2292_v30 = vtrunc.f32 %v1679_v50  ;;  %v4766_v14 = vld [vmem:[#allocation103_spill] sm:$0xff] }
 0x449   : > { %1951 = vst.msk [vmem:[%s4004_s17 + $0x88] sm:$0xff] %vm1869_vm3, %v1919_v48  ;;  %v1902_v6 = vsel %vm1836_vm2, %v4765_v40, %v2287_v2  ;;  %v1743_v35 = vsub.f32 %v1619_v22, %v1679_v50  ;;  %v2319_v32 = vcvt.f32.s32 %v2318_v28  ;;  %v1368_v56 = vsub.f32 1.0, %v4766_v14  ;;  %v1651_v63 = vpop.xlane.xlu1 %1650 }
 0x44a   : > { %v1854_v37 = vsel %vm1836_vm2, %v3926_v42, %v1821_v21  ;;  %1934 = vst.msk [vmem:[%s4004_s17] sm:$0xff] %vm1869_vm3, %v1902_v6  ;;  %v1371_v48 = vsub.f32 1.0, %v4767_v18  ;;  %v1837_v19 = vsel %vm1836_vm2, %v3929_v23, %v1804_v13  ;;  %v1788_v2 = vsub.f32 1.0, %v1756_v25  ;;  %v4771_v25 = vld [vmem:[#allocation59_spill] sm:$0xff] }
 0x44b   : > { %1887 = vst.msk [vmem:[%s4018_s20 + $0x88] sm:$0xff] %vm1869_vm3, %v1854_v37  ;;  %1870 = vst.msk [vmem:[%s4018_s20] sm:$0xff] %vm1869_vm3, %v1837_v19  ;;  %v2293_v42 = vcvt.f32.s32 %v2292_v30  ;;  %v1775_v16 = vsub.f32 1.0, %v1743_v35  ;;  %v4769_v22 = vcvt.f32.s32 %v4768_v24  ;;  %v1695_v50 = vfloor.f32 %v1651_v63 }
 0x44c   : > { %v4069_v28 = vmul.f32 %v1385_v47, %v3909_v55  ;;  %v1384_v18 = vsub.f32 1.0, %v3685_v39  ;;  %v4770_v0 = vfloor.f32 %v3687_v27  ;;  %v1820_v13 = vmul.f32 %v1788_v2, %v3862_v52 }
 0x44d   : > { %v1918_v21 = vsel %vm1836_vm2, %v4769_v22, %v2319_v32  ;;  %v1617_v40 = vpop.xlane.xlu0 %1616  ;;  %v1807_v6 = vmul.f32 %v1775_v16, %v3860_v20  ;;  %v4772_v37 = vcvt.f32.s32 %v4771_v25  ;;  %v2324_v30 = vtrunc.f32 %v1695_v50 }
 0x44e   : > { %v4075_v23 = vsub.f32 %v3687_v27, %v4770_v0  ;;  %1950 = vst.msk [vmem:[%s4004_s17 + $0x80] sm:$0xff] %vm1869_vm3, %v1918_v21  ;;  %v1759_v39 = vsub.f32 %v1651_v63, %v1695_v50  ;;  %v4085_v35 = vmul.f32 %v1368_v56, %v3912_v38  ;;  %v4088_v27 = vmul.f32 %v1371_v48, %v3914_v8  ;;  %v1623_v20 = vpop.xlane.xlu1 %1622 }
 0x44f   : > { %v1905_v47 = vsel %vm1836_vm2, %v4772_v37, %v2293_v42  ;;  %v1853_v52 = vsel %vm1836_vm2, %v3938_v57, %v1820_v13  ;;  %v1678_v32 = vfloor.f32 %v1617_v40  ;;  %v1840_v14 = vsel %vm1836_vm2, %v3944_v33, %v1807_v6  ;;  %v4773_v33 = vld [vmem:[#allocation61_spill] sm:$0xff] }
 0x450   : > { %1937 = vst.msk [vmem:[%s4004_s17 + $0x18] sm:$0xff] %vm1869_vm3, %v1905_v47  ;;  %1886 = vst.msk [vmem:[%s4018_s20 + $0x80] sm:$0xff] %vm1869_vm3, %v1853_v52  ;;  %v2325_v19 = vcvt.f32.s32 %v2324_v30  ;;  %v1791_v2 = vsub.f32 1.0, %v1759_v39  ;;  %v1681_v56 = vfloor.f32 %v1623_v20  ;;  %v4099_v63 = vmul.f32 %v1384_v18, %v3916_v58  ;;  %v4775_v52 = vld [vmem:[#allocation63_spill] sm:$0xff] }
 0x451   : > { %v1387_v48 = vsub.f32 1.0, %v4075_v23  ;;  %1873 = vst.msk [vmem:[%s4018_s20 + $0x18] sm:$0xff] %vm1869_vm3, %v1840_v14  ;;  %v2290_v42 = vtrunc.f32 %v1678_v32  ;;  %v1742_v57 = vsub.f32 %v1617_v40, %v1678_v32  ;;  %v1649_v16 = vpop.xlane.xlu0 %1648  ;;  %v4774_v22 = vcvt.f32.s32 %v4773_v33 }
 0x452   : > { %v1823_v24 = vmul.f32 %v1791_v2, %v3864_v45  ;;  %v2296_v50 = vtrunc.f32 %v1681_v56  ;;  %v1745_v0 = vsub.f32 %v1623_v20, %v1681_v56  ;;  %v1370_v13 = vsub.f32 1.0, %v3709_v7  ;;  %v1655_v37 = vpop.xlane.xlu1 %1654  ;;  %v4777_v56 = vld [vmem:[#allocation65_spill] sm:$0xff] }
 0x453   : > { %v1921_v21 = vsel %vm1836_vm2, %v4774_v22, %v2325_v19  ;;  %v2291_v18 = vcvt.f32.s32 %v2290_v42  ;;  %v1774_v6 = vsub.f32 1.0, %v1742_v57  ;;  %v1694_v25 = vfloor.f32 %v1649_v16 }
 0x454   : > { %1953 = vst.msk [vmem:[%s4004_s17 + $0x98] sm:$0xff] %vm1869_vm3, %v1921_v21  ;;  %v1856_v40 = vsel %vm1836_vm2, %v3947_v59, %v1823_v24  ;;  %v2297_v45 = vcvt.f32.s32 %v2296_v50  ;;  %v1777_v47 = vsub.f32 1.0, %v1745_v0  ;;  %v1697_v30 = vfloor.f32 %v1655_v37 }
 0x455   : > { %1889 = vst.msk [vmem:[%s4018_s20 + $0x98] sm:$0xff] %vm1869_vm3, %v1856_v40  ;;  %v1806_v39 = vmul.f32 %v1774_v6, %v3866_v61  ;;  %v4776_v32 = vcvt.f32.s32 %v4775_v52  ;;  %v2322_v14 = vtrunc.f32 %v1694_v25  ;;  %v1758_v19 = vsub.f32 %v1649_v16, %v1694_v25  ;;  %v1621_v2 = vpop.xlane.xlu0 %1620  ;;  %v4779_v25 = vld [vmem:[#allocation67_spill] sm:$0xff] }
 0x456   : > { %v1809_v59 = vmul.f32 %v1777_v47, %v3868_v44  ;;  %v4778_v42 = vcvt.f32.s32 %v4777_v56  ;;  %v2328_v24 = vtrunc.f32 %v1697_v30  ;;  %v1761_v33 = vsub.f32 %v1655_v37, %v1697_v30  ;;  %v1627_v50 = vpop.xlane.xlu1 %1626 }
 0x457   : > { %v1904_v20 = vsel %vm1836_vm2, %v4776_v32, %v2291_v18  ;;  %v1839_v61 = vsel %vm1836_vm2, %v3952_v46, %v1806_v39  ;;  %v2323_v22 = vcvt.f32.s32 %v2322_v14  ;;  %v1790_v16 = vsub.f32 1.0, %v1758_v19  ;;  %v4781_v39 = vld [vmem:[#allocation69_spill] sm:$0xff] }
 0x458   : > { %1936 = vst.msk [vmem:[%s4004_s17 + $0x10] sm:$0xff] %vm1869_vm3, %v1904_v20  ;;  %v1907_v57 = vsel %vm1836_vm2, %v4778_v42, %v2297_v45  ;;  %v1680_v21 = vfloor.f32 %v1621_v2  ;;  %1872 = vst.msk [vmem:[%s4018_s20 + $0x10] sm:$0xff] %vm1869_vm3, %v1839_v61  ;;  %v1842_v44 = vsel %vm1836_vm2, %v3955_v34, %v1809_v59  ;;  %v2329_v0 = vcvt.f32.s32 %v2328_v24 }
 0x459   : > { %1939 = vst.msk [vmem:[%s4004_s17 + $0x28] sm:$0xff] %vm1869_vm3, %v1907_v57  ;;  %v1793_v18 = vsub.f32 1.0, %v1761_v33  ;;  %v1683_v6 = vfloor.f32 %v1627_v50  ;;  %1875 = vst.msk [vmem:[%s4018_s20 + $0x28] sm:$0xff] %vm1869_vm3, %v1842_v44  ;;  %v1822_v46 = vmul.f32 %v1790_v16, %v3870_v11  ;;  %v4780_v37 = vcvt.f32.s32 %v4779_v25  ;;  %v1653_v30 = vpop.xlane.xlu0 %1652  ;;  %v4783_v33 = vld [vmem:[#allocation71_spill] sm:$0xff]  ;;  %v4785_v44 = vld [vmem:[#allocation73_spill] sm:$0xff] }
 0x45a   : > { %v2294_v45 = vtrunc.f32 %v1680_v21  ;;  %v1744_v47 = vsub.f32 %v1621_v2, %v1680_v21  ;;  %v4782_v52 = vcvt.f32.s32 %v4781_v39  ;;  %v1696_v59 = vfloor.f32 %v1653_v30  ;;  %v1659_v56 = vpop.xlane.xlu1 %1658  ;;  %v4787_v39 = vld [vmem:[#allocation75_spill] sm:$0xff] }
 0x45b   : > { %v1920_v40 = vsel %vm1836_vm2, %v4780_v37, %v2323_v22  ;;  %v1825_v34 = vmul.f32 %v1793_v18, %v3872_v60  ;;  %v2300_v20 = vtrunc.f32 %v1683_v6  ;;  %v1747_v14 = vsub.f32 %v1627_v50, %v1683_v6 }
 0x45c   : > { %1952 = vst.msk [vmem:[%s4004_s17 + $0x90] sm:$0xff] %vm1869_vm3, %v1920_v40  ;;  %v1923_v32 = vsel %vm1836_vm2, %v4782_v52, %v2329_v0  ;;  %v1855_v11 = vsel %vm1836_vm2, %v3960_v9, %v1822_v46  ;;  %v2295_v19 = vcvt.f32.s32 %v2294_v45  ;;  %v1776_v2 = vsub.f32 1.0, %v1744_v47 }
 0x45d   : > { %1955 = vst.msk [vmem:[%s4004_s17 + $0xa8] sm:$0xff] %vm1869_vm3, %v1923_v32  ;;  %1888 = vst.msk [vmem:[%s4018_s20 + $0x90] sm:$0xff] %vm1869_vm3, %v1855_v11  ;;  %v1858_v60 = vsel %vm1836_vm2, %v3963_v43, %v1825_v34  ;;  %v2301_v42 = vcvt.f32.s32 %v2300_v20  ;;  %v1779_v57 = vsub.f32 1.0, %v1747_v14  ;;  %v1699_v24 = vfloor.f32 %v1659_v56  ;;  %v1625_v50 = vpop.xlane.xlu0 %1624 }
 0x45e   : > { %1891 = vst.msk [vmem:[%s4018_s20 + $0xa8] sm:$0xff] %vm1869_vm3, %v1858_v60  ;;  %v1808_v9 = vmul.f32 %v1776_v2, %v3874_v10  ;;  %v4784_v61 = vcvt.f32.s32 %v4783_v33  ;;  %v2326_v16 = vtrunc.f32 %v1696_v59  ;;  %v1760_v21 = vsub.f32 %v1653_v30, %v1696_v59  ;;  %v1631_v45 = vpop.xlane.xlu1 %1630 }
 0x45f   : > { %v1811_v43 = vmul.f32 %v1779_v57, %v3876_v53  ;;  %v4786_v0 = vcvt.f32.s32 %v4785_v44  ;;  %v2332_v6 = vtrunc.f32 %v1699_v24  ;;  %v1763_v46 = vsub.f32 %v1659_v56, %v1699_v24 }
 0x460   : > { %v1906_v22 = vsel %vm1836_vm2, %v4784_v61, %v2295_v19  ;;  %v1841_v10 = vsel %vm1836_vm2, %v3966_v49, %v1808_v9  ;;  %v2327_v25 = vcvt.f32.s32 %v2326_v16  ;;  %v1792_v37 = vsub.f32 1.0, %v1760_v21  ;;  %v4789_v19 = vld [vmem:[#allocation77_spill] sm:$0xff]  ;;  %v4791_v16 = vld [vmem:[#allocation79_spill] sm:$0xff] }
 0x461   : > { %1938 = vst.msk [vmem:[%s4004_s17 + $0x20] sm:$0xff] %vm1869_vm3, %v1906_v22  ;;  %v1909_v18 = vsel %vm1836_vm2, %v4786_v0, %v2301_v42  ;;  %v1682_v40 = vfloor.f32 %v1625_v50  ;;  %1874 = vst.msk [vmem:[%s4018_s20 + $0x20] sm:$0xff] %vm1869_vm3, %v1841_v10  ;;  %v1844_v53 = vsel %vm1836_vm2, %v3969_v4, %v1811_v43  ;;  %v2333_v47 = vcvt.f32.s32 %v2332_v6  ;;  %v1657_v11 = vpop.xlane.xlu0 %1656  ;;  %v4794_v6 = vld [vmem:[#allocation81_spill] sm:$0xff] }
 0x462   : > { %1941 = vst.msk [vmem:[%s4004_s17 + $0x38] sm:$0xff] %vm1869_vm3, %v1909_v18  ;;  %v1795_v30 = vsub.f32 1.0, %v1763_v46  ;;  %v1685_v34 = vfloor.f32 %v1631_v45  ;;  %1877 = vst.msk [vmem:[%s4018_s20 + $0x38] sm:$0xff] %vm1869_vm3, %v1844_v53  ;;  %v1824_v49 = vmul.f32 %v1792_v37, %v3878_v29  ;;  %v4788_v52 = vcvt.f32.s32 %v4787_v39  ;;  %v1663_v9 = vpop.xlane.xlu1 %1662  ;;  %v4793_v18 = vld [vmem:[#allocation47_spill] sm:$0xff] }
 0x463   : > { %v2298_v20 = vtrunc.f32 %v1682_v40  ;;  %v1746_v14 = vsub.f32 %v1625_v50, %v1682_v40  ;;  %v4790_v2 = vcvt.f32.s32 %v4789_v19  ;;  %v1698_v24 = vfloor.f32 %v1657_v11 }
 0x464   : > { %v1922_v32 = vsel %vm1836_vm2, %v4788_v52, %v2327_v25  ;;  %v1827_v4 = vmul.f32 %v1795_v30, %v3880_v17  ;;  %v2304_v56 = vtrunc.f32 %v1685_v34  ;;  %v1749_v60 = vsub.f32 %v1631_v45, %v1685_v34  ;;  %v4797_v34 = vld [vmem:[#allocation53_spill] sm:$0xff] }
 0x465   : > { %1954 = vst.msk [vmem:[%s4004_s17 + $0xa0] sm:$0xff] %vm1869_vm3, %v1922_v32  ;;  %v1925_v59 = vsel %vm1836_vm2, %v4790_v2, %v2333_v47  ;;  %v1857_v29 = vsel %vm1836_vm2, %v3972_v54, %v1824_v49  ;;  %v2299_v42 = vcvt.f32.s32 %v2298_v20  ;;  %v1778_v57 = vsub.f32 1.0, %v1746_v14  ;;  %v1629_v0 = vpop.xlane.xlu0 %1628  ;;  %v4798_v14 = vld [vmem:[#allocation83_spill] sm:$0xff] }
 0x466   : > { %1957 = vst.msk [vmem:[%s4004_s17 + $0xb8] sm:$0xff] %vm1869_vm3, %v1925_v59  ;;  %1890 = vst.msk [vmem:[%s4018_s20 + $0xa0] sm:$0xff] %vm1869_vm3, %v1857_v29  ;;  %v1860_v17 = vsel %vm1836_vm2, %v3975_v5, %v1827_v4  ;;  %v2305_v33 = vcvt.f32.s32 %v2304_v56  ;;  %v1781_v61 = vsub.f32 1.0, %v1749_v60  ;;  %v1701_v22 = vfloor.f32 %v1663_v9  ;;  %v1635_v30 = vpop.xlane.xlu1 %1634  ;;  %v4800_v60 = vld [vmem:[#allocation85_spill] sm:$0xff] }
 0x467   : > { %1893 = vst.msk [vmem:[%s4018_s20 + $0xb8] sm:$0xff] %vm1869_vm3, %v1860_v17  ;;  %v1810_v54 = vmul.f32 %v1778_v57, %v3882_v1  ;;  %v4792_v21 = vcvt.f32.s32 %v4791_v16  ;;  %v2330_v43 = vtrunc.f32 %v1698_v24  ;;  %v1762_v44 = vsub.f32 %v1657_v11, %v1698_v24  ;;  %v4796_v1 = vld [vmem:[#allocation51_spill] sm:$0xff] }
 0x468   : > { %v1813_v5 = vmul.f32 %v1781_v61, %v4793_v18  ;;  %v4795_v46 = vcvt.f32.s32 %v4794_v6  ;;  %v2336_v25 = vtrunc.f32 %v1701_v22  ;;  %v1765_v37 = vsub.f32 %v1663_v9, %v1701_v22 }
 0x469   : > { %v1908_v50 = vsel %vm1836_vm2, %v4792_v21, %v2299_v42  ;;  %v1843_v40 = vsel %vm1836_vm2, %v4796_v1, %v1810_v54  ;;  %v2331_v45 = vcvt.f32.s32 %v2330_v43  ;;  %v1794_v53 = vsub.f32 1.0, %v1762_v44  ;;  %v1661_v59 = vpop.xlane.xlu0 %1660  ;;  %v4803_v54 = vld [vmem:[#allocation27_spill] sm:$0xff]  ;;  %v4804_v43 = vld [vmem:[#allocation48_spill] sm:$0xff]  ;;  %v4808_v1 = vld [vmem:[#allocation89_spill] sm:$0xff] }
 0x46a   : > { %1940 = vst.msk [vmem:[%s4004_s17 + $0x30] sm:$0xff] %vm1869_vm3, %v1908_v50  ;;  %v1911_v10 = vsel %vm1836_vm2, %v4795_v46, %v2305_v33  ;;  %v1684_v47 = vfloor.f32 %v1629_v0  ;;  %1876 = vst.msk [vmem:[%s4018_s20 + $0x30] sm:$0xff] %vm1869_vm3, %v1843_v40  ;;  %v1846_v49 = vsel %vm1836_vm2, %v4797_v34, %v1813_v5  ;;  %v2337_v39 = vcvt.f32.s32 %v2336_v25  ;;  %v1667_v22 = vpop.xlane.xlu1 %1666  ;;  %v4807_v25 = vld [vmem:[#allocation49_spill] sm:$0xff] }
 0x46b   : > { %1943 = vst.msk [vmem:[%s4004_s17 + $0x48] sm:$0xff] %vm1869_vm3, %v1911_v10  ;;  %v1797_v52 = vsub.f32 1.0, %v1765_v37  ;;  %v1687_v32 = vfloor.f32 %v1635_v30  ;;  %1879 = vst.msk [vmem:[%s4018_s20 + $0x48] sm:$0xff] %vm1869_vm3, %v1846_v49  ;;  %v1826_v20 = vmul.f32 %v1794_v53, %v3886_v51  ;;  %v4799_v11 = vcvt.f32.s32 %v4798_v14  ;;  %v4802_v51 = vld [vmem:[#allocation24_spill] sm:$0xff] }
 0x46c   : > { %v2302_v19 = vtrunc.f32 %v1684_v47  ;;  %v1748_v2 = vsub.f32 %v1629_v0, %v1684_v47  ;;  %v4801_v29 = vcvt.f32.s32 %v4800_v60  ;;  %v1700_v61 = vfloor.f32 %v1661_v59  ;;  %v4805_v0 = vld [vmem:[#allocation87_spill] sm:$0xff] }
 0x46d   : > { %v1924_v4 = vsel %vm1836_vm2, %v4799_v11, %v2331_v45  ;;  %v1829_v56 = vmul.f32 %v1797_v52, %v3888_v41  ;;  %v2308_v57 = vtrunc.f32 %v1687_v32  ;;  %v1751_v24 = vsub.f32 %v1635_v30, %v1687_v32  ;;  %v1633_v10 = vpop.xlane.xlu0 %1632  ;;  %v4810_v30 = vld [vmem:[#allocation28_spill] sm:$0xff] }
 0x46e   : > { %1956 = vst.msk [vmem:[%s4004_s17 + $0xb0] sm:$0xff] %vm1869_vm3, %v1924_v4  ;;  %v1927_v42 = vsel %vm1836_vm2, %v4801_v29, %v2337_v39  ;;  %v1859_v9 = vsel %vm1836_vm2, %v4802_v51, %v1826_v20  ;;  %v2303_v17 = vcvt.f32.s32 %v2302_v19  ;;  %v1780_v33 = vsub.f32 1.0, %v1748_v2  ;;  %v1639_v32 = vpop.xlane.xlu1 %1638  ;;  %v4811_v20 = vld [vmem:[#allocation36_spill] sm:$0xff]  ;;  %v4812_v2 = vld [vmem:[#allocation50_spill] sm:$0xff] }
 0x46f   : > { %1959 = vst.msk [vmem:[%s4004_s17 + $0xc8] sm:$0xff] %vm1869_vm3, %v1927_v42  ;;  %1892 = vst.msk [vmem:[%s4018_s20 + $0xb0] sm:$0xff] %vm1869_vm3, %v1859_v9  ;;  %v1862_v41 = vsel %vm1836_vm2, %v4803_v54, %v1829_v56  ;;  %v2309_v16 = vcvt.f32.s32 %v2308_v57  ;;  %v1783_v21 = vsub.f32 1.0, %v1751_v24  ;;  %v1703_v50 = vfloor.f32 %v1667_v22  ;;  %v4813_v56 = vld [vmem:[#allocation91_spill] sm:$0xff]  ;;  %v4815_v9 = vld [vmem:[#allocation93_spill] sm:$0xff] }
 0x470   : > { %1895 = vst.msk [vmem:[%s4018_s20 + $0xc8] sm:$0xff] %vm1869_vm3, %v1862_v41  ;;  %v1812_v44 = vmul.f32 %v1780_v33, %v4804_v43  ;;  %v4806_v18 = vcvt.f32.s32 %v4805_v0  ;;  %v2334_v6 = vtrunc.f32 %v1700_v61  ;;  %v1764_v46 = vsub.f32 %v1661_v59, %v1700_v61  ;;  %v4817_v54 = vld [vmem:[#allocation35_spill] sm:$0xff] }
 0x471   : > { %v1815_v37 = vmul.f32 %v1783_v21, %v4807_v25  ;;  %v4809_v40 = vcvt.f32.s32 %v4808_v1  ;;  %v2340_v53 = vtrunc.f32 %v1703_v50  ;;  %v1767_v47 = vsub.f32 %v1667_v22, %v1703_v50  ;;  %v1665_v24 = vpop.xlane.xlu0 %1664 }
 0x472   : > { %v1910_v5 = vsel %vm1836_vm2, %v4806_v18, %v2303_v17  ;;  %v1845_v34 = vsel %vm1836_vm2, %v4810_v30, %v1812_v44  ;;  %v2335_v49 = vcvt.f32.s32 %v2334_v6  ;;  %v1796_v39 = vsub.f32 1.0, %v1764_v46  ;;  %v1671_v43 = vpop.xlane.xlu1 %1670  ;;  %v4818_v6 = vld [vmem:[#allocation95_spill] sm:$0xff] }
 0x473   : > { %1942 = vst.msk [vmem:[%s4004_s17 + $0x40] sm:$0xff] %vm1869_vm3, %v1910_v5  ;;  %v1913_v45 = vsel %vm1836_vm2, %v4809_v40, %v2309_v16  ;;  %v1686_v52 = vfloor.f32 %v1633_v10  ;;  %1878 = vst.msk [vmem:[%s4018_s20 + $0x40] sm:$0xff] %vm1869_vm3, %v1845_v34  ;;  %v1848_v14 = vsel %vm1836_vm2, %v4811_v20, %v1815_v37  ;;  %v2341_v11 = vcvt.f32.s32 %v2340_v53  ;;  %v4820_v40 = vld [vmem:[#allocation97_spill] sm:$0xff] }
 0x474   : > { %1945 = vst.msk [vmem:[%s4004_s17 + $0x58] sm:$0xff] %vm1869_vm3, %v1913_v45  ;;  %v1799_v4 = vsub.f32 1.0, %v1767_v47  ;;  %v1689_v19 = vfloor.f32 %v1639_v32  ;;  %1881 = vst.msk [vmem:[%s4018_s20 + $0x58] sm:$0xff] %vm1869_vm3, %v1848_v14  ;;  %v1828_v59 = vmul.f32 %v1796_v39, %v4812_v2  ;;  %v4814_v60 = vcvt.f32.s32 %v4813_v56 }
 0x475   : > { %v2306_v42 = vtrunc.f32 %v1686_v52  ;;  %v1750_v57 = vsub.f32 %v1633_v10, %v1686_v52  ;;  %v4816_v17 = vcvt.f32.s32 %v4815_v9  ;;  %v1702_v50 = vfloor.f32 %v1665_v24  ;;  %v1637_v1 = vpop.xlane.xlu0 %1636 }
 0x476   : > { %v1926_v29 = vsel %vm1836_vm2, %v4814_v60, %v2335_v49  ;;  %v1831_v51 = vmul.f32 %v1799_v4, %v3897_v36  ;;  %v2312_v61 = vtrunc.f32 %v1689_v19  ;;  %v1753_v22 = vsub.f32 %v1639_v32, %v1689_v19  ;;  %v1643_v52 = vpop.xlane.xlu1 %1642  ;;  %v4824_v60 = vld [vmem:[#allocation101_spill] sm:$0xff] }
 0x477   : > { %1958 = vst.msk [vmem:[%s4004_s17 + $0xc0] sm:$0xff] %vm1869_vm3, %v1926_v29  ;;  %v1929_v33 = vsel %vm1836_vm2, %v4816_v17, %v2341_v11  ;;  %v1861_v41 = vsel %vm1836_vm2, %v4817_v54, %v1828_v59  ;;  %v2307_v16 = vcvt.f32.s32 %v2306_v42  ;;  %v1782_v21 = vsub.f32 1.0, %v1750_v57  ;;  %v4822_v11 = vld [vmem:[#allocation99_spill] sm:$0xff] }
 0x478   : > { %1961 = vst.msk [vmem:[%s4004_s17 + $0xd8] sm:$0xff] %vm1869_vm3, %v1929_v33  ;;  %1894 = vst.msk [vmem:[%s4018_s20 + $0xc0] sm:$0xff] %vm1869_vm3, %v1861_v41  ;;  %v1864_v36 = vsel %vm1836_vm2, %v4025_v12, %v1831_v51  ;;  %v2313_v44 = vcvt.f32.s32 %v2312_v61  ;;  %v1785_v0 = vsub.f32 1.0, %v1753_v22  ;;  %v1705_v18 = vfloor.f32 %v1671_v43 }
 0x479   : > { %1897 = vst.msk [vmem:[%s4018_s20 + $0xd8] sm:$0xff] %vm1869_vm3, %v1864_v36  ;;  %v1814_v5 = vmul.f32 %v1782_v21, %v3902_v15  ;;  %v4819_v46 = vcvt.f32.s32 %v4818_v6  ;;  %v2338_v25 = vtrunc.f32 %v1702_v50  ;;  %v1766_v37 = vsub.f32 %v1665_v24, %v1702_v50  ;;  %v1669_v56 = vpop.xlane.xlu0 %1668  ;;  %v4827_v21 = vld [vmem:[#allocation102_spill] sm:$0xff] }
 0x47a   : > { %v1817_v12 = vmul.f32 %v1785_v0, %v3905_v31  ;;  %v4821_v45 = vcvt.f32.s32 %v4820_v40  ;;  %v2344_v47 = vtrunc.f32 %v1705_v18  ;;  %v1769_v30 = vsub.f32 %v1671_v43, %v1705_v18  ;;  %v1675_v61 = vpop.xlane.xlu1 %1674  ;;  %v4829_v18 = vld [vmem:[#allocation104_spill] sm:$0xff] }
 0x47b   : > { %v1912_v10 = vsel %vm1836_vm2, %v4819_v46, %v2307_v16  ;;  %v1847_v15 = vsel %vm1836_vm2, %v4028_v3, %v1814_v5  ;;  %v2339_v34 = vcvt.f32.s32 %v2338_v25  ;;  %v1798_v49 = vsub.f32 1.0, %v1766_v37 }
 0x47c   : > { %1944 = vst.msk [vmem:[%s4004_s17 + $0x50] sm:$0xff] %vm1869_vm3, %v1912_v10  ;;  %v1915_v53 = vsel %vm1836_vm2, %v4821_v45, %v2313_v44  ;;  %v1688_v39 = vfloor.f32 %v1637_v1  ;;  %1880 = vst.msk [vmem:[%s4018_s20 + $0x50] sm:$0xff] %vm1869_vm3, %v1847_v15  ;;  %v1850_v31 = vsel %vm1836_vm2, %v4035_v26, %v1817_v12  ;;  %v2345_v32 = vcvt.f32.s32 %v2344_v47  ;;  %v4831_v12 = vld [vmem:[#allocation109_spill] sm:$0xff] }
 0x47d   : > { %1947 = vst.msk [vmem:[%s4004_s17 + $0x68] sm:$0xff] %vm1869_vm3, %v1915_v53  ;;  %v1801_v20 = vsub.f32 1.0, %v1769_v30  ;;  %v1691_v14 = vfloor.f32 %v1643_v52  ;;  %1883 = vst.msk [vmem:[%s4018_s20 + $0x68] sm:$0xff] %vm1869_vm3, %v1850_v31  ;;  %v1830_v3 = vmul.f32 %v1798_v49, %v3907_v62  ;;  %v4823_v4 = vcvt.f32.s32 %v4822_v11  ;;  %v4826_v62 = vld [vmem:[#allocation39_spill] sm:$0xff]  ;;  %v1641_v0 = vpop.xlane.xlu0 %1640  ;;  %v4833_v30 = vld [vmem:[#allocation106_spill] sm:$0xff] }
 0x47e   : > { %v2310_v2 = vtrunc.f32 %v1688_v39  ;;  %v1752_v59 = vsub.f32 %v1637_v1, %v1688_v39  ;;  %v4825_v29 = vcvt.f32.s32 %v4824_v60  ;;  %v1704_v33 = vfloor.f32 %v1669_v56  ;;  %v4835_v31 = vld [vmem:[#allocation52_spill] sm:$0xff] }
 0x47f   : > { %v1928_v19 = vsel %vm1836_vm2, %v4823_v4, %v2339_v34  ;;  %v1833_v26 = vmul.f32 %v1801_v20, %v3909_v55  ;;  %v2316_v57 = vtrunc.f32 %v1691_v14  ;;  %v1755_v24 = vsub.f32 %v1643_v52, %v1691_v14  ;;  %v4836_v20 = vld [vmem:[#allocation107_spill] sm:$0xff]  ;;  %v4838_v11 = vld [vmem:[#allocation32_spill] sm:$0xff] }
 0x480   : > { %1960 = vst.msk [vmem:[%s4004_s17 + $0xd0] sm:$0xff] %vm1869_vm3, %v1928_v19  ;;  %v1931_v42 = vsel %vm1836_vm2, %v4825_v29, %v2345_v32  ;;  %v1863_v51 = vsel %vm1836_vm2, %v4826_v62, %v1830_v3  ;;  %v2311_v9 = vcvt.f32.s32 %v2310_v2  ;;  %v1784_v17 = vsub.f32 1.0, %v1752_v59  ;;  %v4839_v29 = vld [vmem:[#allocation108_spill] sm:$0xff] }
 0x481   : > { %1963 = vst.msk [vmem:[%s4004_s17 + $0xe8] sm:$0xff] %vm1869_vm3, %v1931_v42  ;;  %1896 = vst.msk [vmem:[%s4018_s20 + $0xd0] sm:$0xff] %vm1869_vm3, %v1863_v51  ;;  %v1866_v55 = vsel %vm1836_vm2, %v4069_v28, %v1833_v26  ;;  %v2317_v22 = vcvt.f32.s32 %v2316_v57  ;;  %v1787_v54 = vsub.f32 1.0, %v1755_v24  ;;  %v1707_v41 = vfloor.f32 %v1675_v61  ;;  %v1673_v52 = vpop.xlane.xlu0 %1672  ;;  %v4841_v24 = vld [vmem:[#allocation31_spill] sm:$0xff] }
 0x482   : > { %1899 = vst.msk [vmem:[%s4018_s20 + $0xe8] sm:$0xff] %vm1869_vm3, %v1866_v55  ;;  %v1816_v16 = vmul.f32 %v1784_v17, %v3912_v38  ;;  %v4828_v50 = vcvt.f32.s32 %v4827_v21  ;;  %v2342_v36 = vtrunc.f32 %v1704_v33  ;;  %v1768_v44 = vsub.f32 %v1669_v56, %v1704_v33 }
 0x483   : > { %v1819_v28 = vmul.f32 %v1787_v54, %v3914_v8  ;;  %v4830_v5 = vcvt.f32.s32 %v4829_v18  ;;  %v2348_v46 = vtrunc.f32 %v1707_v41  ;;  %v1771_v10 = vsub.f32 %v1675_v61, %v1707_v41 }
 0x484   : > { %v1914_v43 = vsel %vm1836_vm2, %v4828_v50, %v2311_v9  ;;  %v1849_v38 = vsel %vm1836_vm2, %v4085_v35, %v1816_v16  ;;  %v2343_v25 = vcvt.f32.s32 %v2342_v36  ;;  %v1800_v37 = vsub.f32 1.0, %v1768_v44 }
 0x485   : > { %1946 = vst.msk [vmem:[%s4004_s17 + $0x60] sm:$0xff] %vm1869_vm3, %v1914_v43  ;;  %v1917_v6 = vsel %vm1836_vm2, %v4830_v5, %v2317_v22  ;;  %v1690_v1 = vfloor.f32 %v1641_v0  ;;  %v4832_v40 = vfloor.f32 %v4831_v12  ;;  %1882 = vst.msk [vmem:[%s4018_s20 + $0x60] sm:$0xff] %vm1869_vm3, %v1849_v38  ;;  %v1852_v8 = vsel %vm1836_vm2, %v4088_v27, %v1819_v28 }
 0x486   : > { %1949 = vst.msk [vmem:[%s4004_s17 + $0x78] sm:$0xff] %vm1869_vm3, %v1917_v6  ;;  %v2349_v53 = vcvt.f32.s32 %v2348_v46  ;;  %v1803_v47 = vsub.f32 1.0, %v1771_v10  ;;  %1885 = vst.msk [vmem:[%s4018_s20 + $0x78] sm:$0xff] %vm1869_vm3, %v1852_v8  ;;  %v1832_v35 = vmul.f32 %v1800_v37, %v3916_v58  ;;  %v4834_v15 = vcvt.f32.s32 %v4833_v30 }
 0x487   : > { %v1354_v45 = vsub.f32 %v4831_v12, %v4832_v40  ;;  %v2314_v49 = vtrunc.f32 %v1690_v1  ;;  %v1754_v39 = vsub.f32 %v1641_v0, %v1690_v1  ;;  %v1419_v32 = vmul.f32 %v1387_v48, %v4835_v31 }
 0x488   : > { %v1930_v34 = vsel %vm1836_vm2, %v4834_v15, %v2343_v25  ;;  %v1835_v27 = vmul.f32 %v1803_v47, %v4835_v31  ;;  %v4837_v14 = vcvt.f32.s32 %v4836_v20  ;;  %v1706_v3 = vfloor.f32 %v1673_v52 }
 0x489   : > { %1962 = vst.msk [vmem:[%s4004_s17 + $0xe0] sm:$0xff] %vm1869_vm3, %v1930_v34  ;;  %v865_v4 = vmul.f32 2.5, %v4838_v11  ;;  %v1865_v19 = vsel %vm1836_vm2, %v4099_v63, %v1832_v35  ;;  %v2315_v23 = vcvt.f32.s32 %v2314_v49  ;;  %v1786_v48 = vsub.f32 1.0, %v1754_v39 }
 0x48a   : > { %v1933_v58 = vsel %vm1836_vm2, %v4837_v14, %v2349_v53  ;;  %v1386_v2 = vsub.f32 1.0, %v1354_v45  ;;  %1898 = vst.msk [vmem:[%s4018_s20 + $0xe0] sm:$0xff] %vm1869_vm3, %v1865_v19  ;;  %v1868_v59 = vsel %vm1836_vm2, %v1419_v32, %v1835_v27  ;;  %v2346_v56 = vtrunc.f32 %v1706_v3 }
 0x48b   : > { %1965 = vst.msk [vmem:[%s4004_s17 + $0xf8] sm:$0xff] %vm1869_vm3, %v1933_v58  ;;  %v1770_v26 = vsub.f32 %v1673_v52, %v1706_v3  ;;  %v1402_v60 = vmul.f32 %v1370_v13, %v865_v4  ;;  %1901 = vst.msk [vmem:[%s4018_s20 + $0xf8] sm:$0xff] %vm1869_vm3, %v1868_v59  ;;  %v1818_v63 = vmul.f32 %v1786_v48, %v865_v4  ;;  %v4840_v42 = vcvt.f32.s32 %v4839_v29  ;;  %v4842_v13 = vld [vmem:[#allocation110_spill] sm:$0xff] }
 0x48c   : > { %v897_v62 = vmul.f32 2.5, %v4841_v24  ;;  %v2347_v51 = vcvt.f32.s32 %v2346_v56  ;;  %v4843_v61 = vcvt.f32.s32 %v4842_v13 }
 0x48d   : > { %v1916_v57 = vsel %vm1836_vm2, %v4840_v42, %v2315_v23  ;;  %v1802_v9 = vsub.f32 1.0, %v1770_v26  ;;  %v1851_v17 = vsel %vm1836_vm2, %v1402_v60, %v1818_v63 }
 0x48e   : > { %1948 = vst.msk [vmem:[%s4004_s17 + $0x70] sm:$0xff] %vm1869_vm3, %v1916_v57  ;;  %v1418_v33 = vmul.f32 %v1386_v2, %v897_v62  ;;  %1884 = vst.msk [vmem:[%s4018_s20 + $0x70] sm:$0xff] %vm1869_vm3, %v1851_v17  ;;  %v1932_v55 = vsel %vm1836_vm2, %v4843_v61, %v2347_v51 }
 0x48f   : > { %v1834_v7 = vmul.f32 %v1802_v9, %v897_v62  ;;  %1964 = vst.msk [vmem:[%s4004_s17 + $0xf0] sm:$0xff] %vm1869_vm3, %v1932_v55 }
 0x491   : > { %v1867_v22 = vsel %vm1836_vm2, %v1418_v33, %v1834_v7 }
 0x492   : > { %1900 = vst.msk [vmem:[%s4018_s20 + $0xf0] sm:$0xff] %vm1869_vm3, %v1867_v22 }
 0x493 PF: > { %s15_s15 = sadd.s32 1, %s2492_s15  }
 0x494   : > { %p12_p4 = scmp.ge.s32.totalorder %s15_s15, 6  }
 0x496   :  { %14 = sbr.rel (!%p12_p4) target bundleno = 1 (0x1), region = 74 }

</bundles_post_ra>
